<compile_context>
chip_gen: v7x
topology: tpu7x:2x2x1
jax: 0.10.0
libtpu: 0.0.40
codegen_flags: <defaults>
</compile_context>

<pallas_src>
import functools

import jax
import jax.numpy as jnp
from jax import lax
from jax.experimental import pallas as pl
from jax.experimental.pallas import tpu as pltpu


def _round_up(x, m):
    return -(-x // m) * m


def _tpu_device_kind():
    try:
        return jax.devices()[0].device_kind.lower()
    except Exception:
        return ""


def _num_parallel_cores():
    kind = _tpu_device_kind()
    # v7x has two TensorCores per chip (v4/v5p megacore similarly benefits from
    # >=2 "parallel" grid steps); v5e/v6e have one -> single big tile.
    return 2 if any(t in kind for t in ("v7", "v4", "v5p")) else 1


def _default_mxu_dtype():
    kind = _tpu_device_kind()
    # bf16 is the native MXU rate on v6e/v7x; keep f32 elsewhere by default.
    return jnp.bfloat16 if any(t in kind for t in ("v6", "v7")) else jnp.float32


def _agent_group_sum(prod, n_agents, embed_dim):
    """sum_a prod[:, a*E:(a+1)*E] -> (rows, E).

    Butterfly of lane rolls (XLU slot, essentially free next to the MXU/VPU
    work) when n_agents is a power of two, otherwise a static tree of adds."""
    if n_agents == 1:
        return prod[:, :embed_dim]
    if (n_agents & (n_agents - 1)) == 0:
        r = prod
        shift = (n_agents * embed_dim) // 2
        while shift >= embed_dim:
            r = r + pltpu.roll(r, shift, axis=1)
            shift //= 2
        return r[:, :embed_dim]
    parts = [prod[:, a * embed_dim:(a + 1) * embed_dim] for a in range(n_agents)]
    while len(parts) > 1:
        nxt = [parts[i] + parts[i + 1] for i in range(0, len(parts) - 1, 2)]
        if len(parts) % 2:
            nxt.append(parts[-1])
        parts = nxt
    return parts[0]


def mixer_kernel(x_ref, w_ref, b_ref, y_ref, *, n_agents, embed_dim, geom):
    A, E = n_agents, embed_dim
    K0p, R0 = geom["K0p"], geom["R0"]
    B1_OFF, QB_OFF, N0 = geom["B1_OFF"], geom["QB_OFF"], geom["N0"]
    W2_OFF, B2_OFF, N1, W1_ROW = (geom["W2_OFF"], geom["B2_OFF"],
                                  geom["N1"], geom["W1_ROW"])

    x = x_ref[...]                                          # (tile, K0p), MXU dtype

    # ---- hypernets layer 0 of all four nets + q broadcast: ONE MXU push ----
    z0 = (jnp.dot(x, w_ref[0:K0p, 0:N0], preferred_element_type=jnp.float32)
          + b_ref[0:1, 0:N0])                               # (tile, N0) f32

    # ---- hypernets layer 1 (hyper_w1 | hyper_w2 | hyper_b2): block-diag push
    h = jnp.maximum(z0[:, 0:R0], 0.0).astype(x.dtype)       # 128-aligned ReLU slice
    z1 = (jnp.dot(h, w_ref[W1_ROW:W1_ROW + R0, 0:N1],
                  preferred_element_type=jnp.float32)
          + b_ref[1:2, 0:N1])                               # (tile, N1) f32

    # ---- mixing layer 1: hidden = ELU(sum_a q_a * |w1_a| + b1) --------------
    prod = z0[:, QB_OFF:QB_OFF + A * E] * jnp.abs(z1[:, 0:A * E])
    acc = _agent_group_sum(prod, A, E) + z0[:, B1_OFF:B1_OFF + E]
    hidden = jnp.where(acc > 0.0, acc, jnp.exp(jnp.minimum(acc, 0.0)) - 1.0)

    # ---- mixing layer 2 + b2: one n/t matmul -> lane-dense (1, tile) row ----
    # y[i] = sum_e hidden[i,e]*|w2[i,e]| + b2[i]
    rhs = jnp.concatenate(
        [hidden * jnp.abs(z1[:, W2_OFF:W2_OFF + E]),
         z1[:, B2_OFF:B2_OFF + 1]], axis=1)                 # (tile, E+1)
    coef8 = b_ref[8:16, 0:E + 1]                            # row 0 = ones(E+1)
    out8 = lax.dot_general(coef8, rhs, (((1,), (1,)), ((), ())),
                           preferred_element_type=jnp.float32)   # (8, tile)
    y_ref[...] = out8[0:1, :].astype(y_ref.dtype)           # unmasked full-lane store


def pack_params(params, n_agents, embed_dim, state_dim, hyper_dim, mxu_dtype):
    """Pack the 14 hypernet weights/biases into two resident slabs.

    w_slab rows [0, K0p):       fused layer-0 [hw1|hw2|hb2|pad|hb1|pad|q-ones]
    w_slab rows [K0p, K0p+R0):  block-diag layer-1 diag(hw1_w1, hw2_w1, hb2_w1)
    b_slab row 0 / 1:           fused layer-0 / layer-1 biases
    b_slab row 8:               ones(E+1) coefficient row of the final reduce
    All column regions start at 128-lane-aligned offsets."""
    A, E, S, H = n_agents, embed_dim, state_dim, hyper_dim
    f32 = jnp.float32

    K0p = _round_up(S + A, 8)            # rows of the fused layer-0 block
    R0 = _round_up(2 * H + E, 128)       # ReLU region width == layer-1 K
    B1_OFF = R0                          # hyper_b1 output columns
    QB_OFF = R0 + _round_up(E, 128)      # broadcast-q columns (128 aligned)
    N0 = QB_OFF + _round_up(A * E, 128)
    W2_OFF = _round_up(A * E, 128)
    B2_OFF = W2_OFF + E
    N1 = B2_OFF + 1
    C = _round_up(max(N0, N1, E + 1), 128)
    W1_ROW = K0p

    w_slab = jnp.zeros((W1_ROW + R0, C), f32)
    # fused layer 0 (input x = [states | q]) -> z0
    w_slab = w_slab.at[0:S, 0:H].set(params["hw1_w0"])
    w_slab = w_slab.at[0:S, H:2 * H].set(params["hw2_w0"])
    w_slab = w_slab.at[0:S, 2 * H:2 * H + E].set(params["hb2_w0"])
    w_slab = w_slab.at[0:S, B1_OFF:B1_OFF + E].set(params["hb1_w0"])
    # block-ones expansion q (A lanes) -> q_b (A*E lanes), no bias / no ReLU
    ones_blk = jnp.kron(jnp.eye(A, dtype=f32), jnp.ones((1, E), f32))
    w_slab = w_slab.at[S:S + A, QB_OFF:QB_OFF + A * E].set(ones_blk)
    # fused layer 1 (block diagonal), consumes relu(z0[:, :R0])
    w_slab = w_slab.at[W1_ROW:W1_ROW + H, 0:A * E].set(params["hw1_w1"])
    w_slab = w_slab.at[W1_ROW + H:W1_ROW + 2 * H, W2_OFF:W2_OFF + E].set(params["hw2_w1"])
    w_slab = w_slab.at[W1_ROW + 2 * H:W1_ROW + 2 * H + E,
                       B2_OFF:B2_OFF + 1].set(params["hb2_w1"])

    b_slab = jnp.zeros((16, C), f32)
    b_slab = b_slab.at[0, 0:H].set(params["hw1_b0"][0])
    b_slab = b_slab.at[0, H:2 * H].set(params["hw2_b0"][0])
    b_slab = b_slab.at[0, 2 * H:2 * H + E].set(params["hb2_b0"][0])
    b_slab = b_slab.at[0, B1_OFF:B1_OFF + E].set(params["hb1_b0"][0])
    b_slab = b_slab.at[1, 0:A * E].set(params["hw1_b1"][0])
    b_slab = b_slab.at[1, W2_OFF:W2_OFF + E].set(params["hw2_b1"][0])
    b_slab = b_slab.at[1, B2_OFF].set(params["hb2_b1"][0, 0])
    b_slab = b_slab.at[8, 0:E + 1].set(1.0)   # coef row: sum(hidden*w2) + b2

    geom = dict(K0p=K0p, R0=R0, B1_OFF=B1_OFF, QB_OFF=QB_OFF, N0=N0,
                W2_OFF=W2_OFF, B2_OFF=B2_OFF, N1=N1, W1_ROW=W1_ROW)
    return w_slab.astype(mxu_dtype), b_slab, geom


def mixer_forward(qvals, states, params, *, heads=5, min_row_tiles=None,
                  max_tile=1024, mxu_dtype=None):
    """Pallas implementation of Mixer.forward.

    qvals:  (B, T, n_agents) f32;  states: (B, T, state_dim) f32.
    Returns a list of `heads` arrays of shape (B, T, 1) (identical, matching
    the PyTorch module, whose heads share one hypernetwork)."""
    B, T, A = qvals.shape
    S = states.shape[-1]
    E = params["hb1_w0"].shape[1]
    H = params["hw1_w0"].shape[1]
    if mxu_dtype is None:
        mxu_dtype = _default_mxu_dtype()
    if min_row_tiles is None:
        min_row_tiles = _num_parallel_cores()

    BT = B * T
    tile = min(max_tile, _round_up(pl.cdiv(BT, min_row_tiles), 8))
    num_tiles = pl.cdiv(BT, tile)
    BT_pad = num_tiles * tile

    w_slab, b_slab, geom = pack_params(params, A, E, S, H, mxu_dtype)
    K0p = geom["K0p"]

    # One row slab [states | qvals] (lane-padded to K0p): a single input DMA
    # per grid step; the q broadcast happens on the MXU via the ones block.
    x = jnp.concatenate([states.reshape(BT, S), qvals.reshape(BT, A)],
                        axis=1).astype(mxu_dtype)
    # TODO(synk): for very large B*T pick tile | B*T (or a tiny tail call)
    # instead of this padded full copy of the inputs.
    x = jnp.pad(x, ((0, BT_pad - BT), (0, K0p - (S + A))))

    kernel = functools.partial(mixer_kernel, n_agents=A, embed_dim=E, geom=geom)

    y = pl.pallas_call(
        kernel,
        out_shape=jax.ShapeDtypeStruct((num_tiles, 1, tile), jnp.float32),
        grid_spec=pltpu.PrefetchScalarGridSpec(
            num_scalar_prefetch=0,
            grid=(num_tiles,),
            in_specs=[
                pl.BlockSpec((tile, K0p), lambda i: (i, 0)),     # [states|q] rows
                pl.BlockSpec(w_slab.shape, lambda i: (0, 0)),    # packed weights
                pl.BlockSpec(b_slab.shape, lambda i: (0, 0)),    # packed biases
            ],
            out_specs=pl.BlockSpec((None, 1, tile), lambda i: (i, 0, 0)),
        ),
        compiler_params=pltpu.CompilerParams(
            dimension_semantics=("parallel",)),
    )(x, w_slab, b_slab)

    y = y.reshape(BT_pad)[:BT].reshape(B, T, 1)
    return [y for _ in range(heads)]


def init_params(key, state_dim, hypernet_embed, n_agents, embed_dim):
    """Deterministic synthetic parameters (shapes match the nn.Module)."""
    ks = jax.random.split(key, 14)

    def lin(kw, kb, fan_in, fan_out):
        bound = 1.0 / jnp.sqrt(fan_in)
        w = jax.random.uniform(kw, (fan_in, fan_out), jnp.float32, -bound, bound)
        b = jax.random.uniform(kb, (1, fan_out), jnp.float32, -bound, bound)
        return w, b

    p = {}
    p["hw1_w0"], p["hw1_b0"] = lin(ks[0], ks[1], state_dim, hypernet_embed)
    p["hw1_w1"], p["hw1_b1"] = lin(ks[2], ks[3], hypernet_embed, n_agents * embed_dim)
    p["hb1_w0"], p["hb1_b0"] = lin(ks[4], ks[5], state_dim, embed_dim)
    p["hw2_w0"], p["hw2_b0"] = lin(ks[6], ks[7], state_dim, hypernet_embed)
    p["hw2_w1"], p["hw2_b1"] = lin(ks[8], ks[9], hypernet_embed, embed_dim)
    p["hb2_w0"], p["hb2_b0"] = lin(ks[10], ks[11], state_dim, embed_dim)
    p["hb2_w1"], p["hb2_b1"] = lin(ks[12], ks[13], embed_dim, 1)
    return p


def mixer_reference(qvals, states, params, heads=5, mxu_dtype=jnp.float32):
    """Pure-JAX reference of the PyTorch forward.

    mxu_dtype=bf16 mirrors the kernel's bf16-MXU-operand mode (operands cast
    at the matmuls, f32 accumulation and element-wise math)."""
    B, T, A = qvals.shape
    S = states.shape[-1]
    E = params["hb1_w0"].shape[1]
    f32 = jnp.float32
    hi = jax.lax.Precision.HIGHEST

    def dot(a, b):
        return jnp.dot(a.astype(mxu_dtype), b.astype(mxu_dtype),
                       preferred_element_type=f32, precision=hi)

    # q passes through the kernel's block-ones MXU expansion (one rounding).
    q = qvals.reshape(B * T, 1, A).astype(mxu_dtype).astype(f32)
    s = states.reshape(B * T, S)
    relu = jax.nn.relu

    w1 = (dot(relu(dot(s, params["hw1_w0"]) + params["hw1_b0"]), params["hw1_w1"])
          + params["hw1_b1"]).reshape(-1, A, E)
    b1 = (dot(s, params["hb1_w0"]) + params["hb1_b0"]).reshape(-1, 1, E)
    w2 = (dot(relu(dot(s, params["hw2_w0"]) + params["hw2_b0"]), params["hw2_w1"])
          + params["hw2_b1"]).reshape(-1, E, 1)
    b2 = (dot(relu(dot(s, params["hb2_w0"]) + params["hb2_b0"]), params["hb2_w1"])
          + params["hb2_b1"]).reshape(-1, 1, 1)
    w1, w2 = jnp.abs(w1), jnp.abs(w2)
    hidden = jax.nn.elu(jnp.matmul(q, w1, precision=hi) + b1)
    y = (jnp.matmul(hidden, w2, precision=hi) + b2).reshape(B, T, -1)
    return [y for _ in range(heads)]


if __name__ == "__main__":
    # args: n_agents=4, mixing_embed_dim=32, state_shape=(32,), hypernet_embed=64
    # B*T = 406 exercises the ragged-tail padding (rounded up to 8-row tiles).
    B, T = 2, 203
    n_agents, embed_dim, state_dim, hypernet_embed = 4, 32, 32, 64
    heads = 5

    key = jax.random.PRNGKey(0)
    k_q, k_s, k_p = jax.random.split(key, 3)
    qvals = jax.random.normal(k_q, (B, T, n_agents), jnp.float32)
    states = jax.random.normal(k_s, (B, T, state_dim), jnp.float32)
    params = init_params(k_p, state_dim, hypernet_embed, n_agents, embed_dim)

    # (1) all-f32 MXU path, two "parallel" grid steps + ragged tail: tight tol.
    out = mixer_forward(qvals, states, params, heads=heads,
                        mxu_dtype=jnp.float32, min_row_tiles=2)
    out = jax.block_until_ready(out)
    ref = mixer_reference(qvals, states, params, heads=heads)
    for o, r in zip(out, ref):
        assert o.shape == (B, T, 1)
        err = float(jnp.max(jnp.abs(o - r)))
        assert jnp.allclose(o, r, rtol=1e-5, atol=1e-5), ("f32 path", err)

    # (2) bf16-MXU-operand path (v6e/v7x fast path), single grid step, checked
    #     against a reference that applies the same operand rounding.
    out_bf = mixer_forward(qvals, states, params, heads=heads,
                           mxu_dtype=jnp.bfloat16, min_row_tiles=1)
    out_bf = jax.block_until_ready(out_bf)
    ref_bf = mixer_reference(qvals, states, params, heads=heads,
                             mxu_dtype=jnp.bfloat16)
    for o, r in zip(out_bf, ref_bf):
        assert o.shape == (B, T, 1)
        err = float(jnp.max(jnp.abs(o - r)))
        assert jnp.allclose(o, r, rtol=1e-3, atol=1e-3), ("bf16 path", err)

    print("KERNEL_OK")
</pallas_src>

<mosaic_0001>
module attributes {stable_mosaic.version = 11 : i64} {
  func.func @mixer_kernel(%arg0: i32, %arg1: memref<208x40xf32, #tpu.memory_space<vmem>>, %arg2: memref<296x512xf32, #tpu.memory_space<vmem>>, %arg3: memref<16x512xf32, #tpu.memory_space<vmem>>, %arg4: memref<1x1x208xf32, #tpu.memory_space<vmem>>) attributes {dimension_semantics = [#tpu.dimension_semantics<parallel>], iteration_bounds = array<i64: 2>, scalar_prefetch = 0 : i64, scratch_operands = 0 : i64, tpu.core_type = #tpu.core_type<tc>, window_params = [{transform_indices = @transform_0, window_bounds = array<i64: 208, 40>}, {pipeline_mode = #tpu.pipeline_mode<synchronous>, transform_indices = @transform_1, window_bounds = array<i64: 296, 512>}, {pipeline_mode = #tpu.pipeline_mode<synchronous>, transform_indices = @transform_2, window_bounds = array<i64: 16, 512>}, {transform_indices = @transform_3, window_bounds = array<i64: 1, 1, 208>}]} {
    %c0 = arith.constant 0 : index
    %c0_0 = arith.constant 0 : index
    %0 = vector.load %arg1[%c0, %c0_0] : memref<208x40xf32, #tpu.memory_space<vmem>>, vector<208x40xf32>
    %c0_1 = arith.constant 0 : index
    %c0_2 = arith.constant 0 : index
    %1 = vector.load %arg2[%c0_1, %c0_2] : memref<296x512xf32, #tpu.memory_space<vmem>>, vector<40x512xf32>
    %cst = arith.constant dense<0.000000e+00> : vector<208x512xf32>
    %2 = tpu.matmul %0, %1, %cst {dimension_numbers = #tpu.dot_dimension_numbers<[1], [0], [0], [1], [0, 0, 1, 1], [], []>} : vector<208x40xf32>, vector<40x512xf32>, vector<208x512xf32> -> vector<208x512xf32>
    %c0_3 = arith.constant 0 : index
    %c0_4 = arith.constant 0 : index
    %3 = vector.load %arg3[%c0_3, %c0_4] : memref<16x512xf32, #tpu.memory_space<vmem>>, vector<1x512xf32>
    %4 = vector.broadcast %3 : vector<1x512xf32> to vector<208x512xf32>
    %5 = arith.addf %2, %4 : vector<208x512xf32>
    %6 = vector.extract_strided_slice %5 {offsets = [0, 0], sizes = [208, 256], strides = [1, 1]} : vector<208x512xf32> to vector<208x256xf32>
    %cst_5 = arith.constant 0.000000e+00 : f32
    %7 = vector.broadcast %cst_5 : f32 to vector<208x256xf32>
    %8 = arith.maximumf %6, %7 : vector<208x256xf32>
    %c40 = arith.constant 40 : index
    %c0_6 = arith.constant 0 : index
    %9 = vector.load %arg2[%c40, %c0_6] : memref<296x512xf32, #tpu.memory_space<vmem>>, vector<256x161xf32>
    %cst_7 = arith.constant dense<0.000000e+00> : vector<208x161xf32>
    %10 = tpu.matmul %8, %9, %cst_7 {dimension_numbers = #tpu.dot_dimension_numbers<[1], [0], [0], [1], [0, 0, 1, 1], [], []>} : vector<208x256xf32>, vector<256x161xf32>, vector<208x161xf32> -> vector<208x161xf32>
    %c1 = arith.constant 1 : index
    %c0_8 = arith.constant 0 : index
    %11 = vector.load %arg3[%c1, %c0_8] : memref<16x512xf32, #tpu.memory_space<vmem>>, vector<1x161xf32>
    %12 = vector.broadcast %11 : vector<1x161xf32> to vector<208x161xf32>
    %13 = arith.addf %10, %12 : vector<208x161xf32>
    %14 = vector.extract_strided_slice %5 {offsets = [0, 384], sizes = [208, 128], strides = [1, 1]} : vector<208x512xf32> to vector<208x128xf32>
    %15 = vector.extract_strided_slice %13 {offsets = [0, 0], sizes = [208, 128], strides = [1, 1]} : vector<208x161xf32> to vector<208x128xf32>
    %16 = math.absf %15 : vector<208x128xf32>
    %17 = arith.mulf %14, %16 : vector<208x128xf32>
    %c64_i32 = arith.constant 64 : i32
    %18 = tpu.dynamic_rotate %17 by %c64_i32 dim 1 : vector<208x128xf32>, i32 -> vector<208x128xf32>
    %19 = arith.addf %17, %18 : vector<208x128xf32>
    %c32_i32 = arith.constant 32 : i32
    %20 = tpu.dynamic_rotate %19 by %c32_i32 dim 1 : vector<208x128xf32>, i32 -> vector<208x128xf32>
    %21 = arith.addf %19, %20 : vector<208x128xf32>
    %22 = vector.extract_strided_slice %21 {offsets = [0, 0], sizes = [208, 32], strides = [1, 1]} : vector<208x128xf32> to vector<208x32xf32>
    %23 = vector.extract_strided_slice %5 {offsets = [0, 256], sizes = [208, 32], strides = [1, 1]} : vector<208x512xf32> to vector<208x32xf32>
    %24 = arith.addf %22, %23 : vector<208x32xf32>
    %cst_9 = arith.constant 0.000000e+00 : f32
    %25 = vector.broadcast %cst_9 : f32 to vector<208x32xf32>
    %26 = arith.cmpf ogt, %24, %25 : vector<208x32xf32>
    %cst_10 = arith.constant 0.000000e+00 : f32
    %27 = vector.broadcast %cst_10 : f32 to vector<208x32xf32>
    %28 = arith.minimumf %24, %27 : vector<208x32xf32>
    %29 = math.exp %28 : vector<208x32xf32>
    %cst_11 = arith.constant 1.000000e+00 : f32
    %30 = vector.broadcast %cst_11 : f32 to vector<208x32xf32>
    %31 = arith.subf %29, %30 : vector<208x32xf32>
    %32 = arith.select %26, %24, %31 : vector<208x32xi1>, vector<208x32xf32>
    %33 = vector.extract_strided_slice %13 {offsets = [0, 128], sizes = [208, 32], strides = [1, 1]} : vector<208x161xf32> to vector<208x32xf32>
    %34 = math.absf %33 : vector<208x32xf32>
    %35 = arith.mulf %32, %34 : vector<208x32xf32>
    %36 = vector.extract_strided_slice %13 {offsets = [0, 160], sizes = [208, 1], strides = [1, 1]} : vector<208x161xf32> to vector<208x1xf32>
    %37 = tpu.concatenate %35, %36 in 1 : vector<208x32xf32>, vector<208x1xf32> -> vector<208x33xf32>
    %c8 = arith.constant 8 : index
    %c0_12 = arith.constant 0 : index
    %38 = vector.load %arg3[%c8, %c0_12] : memref<16x512xf32, #tpu.memory_space<vmem>>, vector<8x33xf32>
    %cst_13 = arith.constant dense<0.000000e+00> : vector<8x208xf32>
    %39 = tpu.matmul %38, %37, %cst_13 {dimension_numbers = #tpu.dot_dimension_numbers<[1], [1], [0], [0], [0, 0, 1, 0], [], []>} : vector<8x33xf32>, vector<208x33xf32>, vector<8x208xf32> -> vector<8x208xf32>
    %40 = vector.extract_strided_slice %39 {offsets = [0, 0], sizes = [1, 208], strides = [1, 1]} : vector<8x208xf32> to vector<1x208xf32>
    %c0_14 = arith.constant 0 : index
    %c0_15 = arith.constant 0 : index
    %c0_16 = arith.constant 0 : index
    %41 = vector.load %arg4[%c0_14, %c0_15, %c0_16] : memref<1x1x208xf32, #tpu.memory_space<vmem>>, vector<1x1x208xf32>
    %42 = vector.shape_cast %41 : vector<1x1x208xf32> to vector<1x208xf32>
    %43 = vector.shape_cast %40 : vector<1x208xf32> to vector<1x1x208xf32>
    tpu.vector_store %arg4[%c0_14, %c0_15, %c0_16], %43 {strides = array<i32>} : memref<1x1x208xf32, #tpu.memory_space<vmem>>, vector<1x1x208xf32>,
    return
  }
  func.func @transform_0(%arg0: i32) -> (i32, i32) {
    %c0_i32 = arith.constant 0 : i32
    %c0_i32_0 = arith.constant 0 : i32
    return %arg0, %c0_i32 : i32, i32
  }
  func.func @transform_1(%arg0: i32) -> (i32, i32) {
    %c0_i32 = arith.constant 0 : i32
    %c0_i32_0 = arith.constant 0 : i32
    %c0_i32_1 = arith.constant 0 : i32
    return %c0_i32, %c0_i32_0 : i32, i32
  }
  func.func @transform_2(%arg0: i32) -> (i32, i32) {
    %c0_i32 = arith.constant 0 : i32
    %c0_i32_0 = arith.constant 0 : i32
    %c0_i32_1 = arith.constant 0 : i32
    return %c0_i32, %c0_i32_0 : i32, i32
  }
  func.func @transform_3(%arg0: i32) -> (i32, i32, i32) {
    %c0_i32 = arith.constant 0 : i32
    %c0_i32_0 = arith.constant 0 : i32
    %c0_i32_1 = arith.constant 0 : i32
    return %arg0, %c0_i32, %c0_i32_0 : i32, i32, i32
  }
}

</mosaic_0001>

<bundles_post_ra>
// kernel: tpu_custom_call.1
= control target key start
LH: loop header
LB: loop body
LE: loop exit
PB: predicated region body
PF: predicated region fallthrough
CT: control target
= control target key end

     0   :  { %8 = vsyncpa [#allocation3], 0  ;;  %s3618_s0 = inlined_call_operand.vmem [shape: f32[416,40], index: 0, kind: input, shape index: {}]   ;;  %s3619_s1 = inlined_call_operand.hbm [shape: f32[296,512], index: 1, kind: input, shape index: {}]   ;;  %s3620_s2 = inlined_call_operand.vmem [shape: f32[16,512], index: 2, kind: input, shape index: {}]   ;;  %s3621_s3 = inlined_call_operand.hbm [shape: f32[2,1,208], index: 3, kind: output, shape index: {}]  }
   0x1   :  { %9 = vsyncpa [#allocation4], 0 }
   0x2   :  { %11 = vsyncpa [#allocation4 + $0x1], 0  ;;  %s2349_s12 = smov 0   ;;  %s2351_s13 = smov 0  }
   0x3   :  { %s2353_s14 = smov 0   ;;  %s2355_s15 = smov 0  }
   0x4 LB: > { %s2370_s16 = sadd.s32 4294967295, %s2318_s15   ;;  %s1857_s17 = sadd.s32 4294967294, %s2318_s15   ;;  %s2318_s15 = sphi %s2355_s15, %s3703_s15   ;;  %s2314_s14 = sphi %s2353_s14, %s3702_s14   ;;  %s2310_s13 = sphi %s2351_s13, %s3701_s13   ;;  %s2306_s12 = sphi %s2349_s12, %s3700_s12  }
   0x5   : > { %s2374_s18 = sadd.s32 1, %s2318_s15   ;;  %s92_s19 = sadd.s32 1, %s2314_s14 }
   0x6   : > { %s89_s20 = ssub.s32 %s2318_s15, %s2374_s18  ;;  %p102_p0 = scmp.ne.s32.totalorder %s2314_s14, %s2310_s13 }
   0x7   : > { %p90_p1 = scmp.eq.s32.totalorder %s89_s20, 0  ;;  %p103_p2 = scmp.eq.s32.totalorder %s2370_s16, 1 }
   0x8   : > { %p108_p3 = scmp.ne.s32.totalorder %s2310_s13, %s2306_s12  ;;  %p109_p4 = scmp.eq.s32.totalorder %s1857_s17, 1 }
   0x9   : > { %s2385_s21 = scalar_select %p90_p1, %s2314_s14, %s92_s19  }
   0xa   : > { %p2387_p5 = por %p103_p2, %p102_p0  ;;  %p2391_p6 = por %p109_p4, %p108_p3 }
   0xb   : > { %p1858_p7 = scmp.ge.s32.totalorder %s2318_s15, 1  ;;  %p116_p8 = scmp.lt.s32.totalorder %s2318_s15, 3 }
   0xc   : > { %s3627_s22 = scalar_select %p2387_p5, 1, 0 }
   0xd   : > { %s3628_s23 = scalar_select %p2391_p6, 1, 0 }
   0xe   : > { %p3622_p9 = scmp.eq.s32.totalorder %s2370_s16, 0  ;;  %p2398_p10 = pnand %p1858_p7, %p116_p8 }
   0xf   : > { %s2320_s25 = smov [#allocation2]   ;;  %s2224_s30 = scalar_lea.hbm %s3619_s1, 18944 }
  0x10   : > { %s3629_s24 = scalar_select %p2398_p10, 1, 0 }
  0x11   : > { %s128_s26 = sshll.u32 %s2320_s25, 4  ;;  %p2121_p11 = pneg %p2398_p10  ;;  %s129_s26 = int_to_ptr.vmem [resolvable:$true] %s128_s26 }
  0x12   : > { %p2225_p13 = scmp.ne.s32.totalorder %s3619_s1, %s2224_s30  ;;  %p2231_p3 = scmp.lt.u32.totalorder %s2224_s30, %s3619_s1 }
  0x13   : > { %p2406_p12 = pnand %p3622_p9, %p2121_p11 }
  0x15   : > { %p2226_p0 = pneg %p2406_p12 }
  0x17   : > { %p2227_p1 = pnand %p2226_p0, %p2225_p13 }
  0x19   : > { %p2228_p2 = pneg %p2227_p1 }
  0x1b   : > { %p2233_p4 = pnand %p2231_p3, %p2228_p2 }
  0x1d   : > { %2236 = shalt.err (!%p2233_p4)
}
  0x1e   : > { %s2237_s8 = scalar_lea.vmem %s129_s26, 18944  ;;  %p2245_p9 = scmp.lt.s32.totalorder %s129_s26, %s129_s26 }
  0x1f   : > { %p2238_p7 = scmp.ne.s32.totalorder %s129_s26, %s2237_s8  ;;  %p2246_p6 = scmp.lt.s32.totalorder %s2237_s8, %s2237_s8 }
  0x21   : > { %p2240_p8 = pnand %p2238_p7, %p2226_p0  ;;  %p2247_p5 = por %p2246_p6, %p2245_p9 }
  0x23   : > { %p2241_p11 = pneg %p2240_p8 }
  0x25   : > { %p2248_p10 = pnand %p2247_p5, %p2241_p11 }
  0x27   : > { %2251 = shalt.err (!%p2248_p10)
}
  0x28   : > { %s2321_s9 = smov 512   ;;  %s2322_s10 = smov 32  }
  0x29   : > { %2124 = dma.hbm_to_vmem [thread:$0]  (!%p2406_p12), %s3619_s1, 18944, %s129_s26, [#allocation3], %s2321_s9, %s2321_s9, %s2322_s10  }
  0x2a   : > { %p3631_p13 = scmp.ne.s32.totalorder %s3629_s24, 0 }
  0x2c   : > { %156 = sbr.rel (%p3631_p13) target bundleno = 1160 (0x488), region = 32 }
  0x33   : > { %p3632_p1 = scmp.eq.s32.totalorder %s2370_s16, 0 }
  0x35   : > { %2297 = dma.done.wait (%p3632_p1), [#allocation3], 18944   ;;  %p3633_p0 = pmov %p3632_p1 }
  0x36   : > { %s180_s19 = smul.u32 26, %s2370_s16  ;;  %v2323_v0 = vmov 0.0   ;;  %v213_v1 = vld [vmem:[#allocation2 + $0x8] sm:$0xff]  ;;  %v212_v3 = vld [vmem:[#allocation2] sm:$0xff]  ;;  %vm254_vm0 = vcmask 326656   ;;  %v215_v42 = vld [vmem:[#allocation2 + $0x18] sm:$0xff] }
  0x37   : > { %2299 = vsyncadd (%p3633_p0), [#allocation3], 4294948352  ;;  %397 = vmatprep.mubr.f32.mxu0 %v2323_v0  ;;  %493 = vmatprep.mubr.f32.mxu1 %v2323_v0  ;;  %v217_v2 = vld [vmem:[#allocation2 + $0x28] sm:$0xff]  ;;  %v216_v5 = vld [vmem:[#allocation2 + $0x20] sm:$0xff]  ;;  %s2324_s4 = smov 64   ;;  %s2325_s5 = smov 32  }
  0x38   : > { %p181_p5 = scmp.lt.s32.totalorder %s180_s19, 51  ;;  %v1977_v4 = vpack.c.bf16 %v217_v2, %v213_v1  ;;  %v221_v6 = vld [vmem:[#allocation2 + $0x48] sm:$0xff]  ;;  %v1979_v8 = vpack.c.bf16 %v216_v5, %v212_v3  ;;  %v220_v10 = vld [vmem:[#allocation2 + $0x40] sm:$0xff]  ;;  %v219_v45 = vld [vmem:[#allocation2 + $0x38] sm:$0xff]  ;;  %vm1567_vm2 = vcmask 261120   ;;  %vm1595_vm4 = vcmask 269312  }
  0x39   : > { %v225_v7 = vld [vmem:[#allocation2 + $0x68] sm:$0xff]  ;;  %v224_v11 = vld [vmem:[#allocation2 + $0x60] sm:$0xff]  ;;  %v1985_v47 = vpack.c.bf16 %v219_v45, %v215_v42  ;;  %v214_v48 = vld [vmem:[#allocation2 + $0x10] sm:$0xff]  ;;  %s177_s8 = sand.u32 1, %s2310_s13   ;;  %s1976_s10 = sshll.u32 %s2370_s16, 5 }
  0x3a   : > { %s3705_s19 = smov (!%p181_p5, %s180_s19), 51  ;;  %v1981_v9 = vpack.c.bf16 %v225_v7, %v221_v6  ;;  %1978 = vmatprep.subr.bf16.mxu0 %v1977_v4  ;;  %2109 = vmatprep.subr.bf16.mxu1 %v1977_v4  ;;  %v1983_v12 = vpack.c.bf16 %v224_v11, %v220_v10  ;;  %v229_v13 = vld [vmem:[#allocation2 + $0x88] sm:$0xff]  ;;  %v228_v14 = vld [vmem:[#allocation2 + $0x80] sm:$0xff]  ;;  %v218_v49 = vld [vmem:[#allocation2 + $0x30] sm:$0xff]  ;;  %s1863_s9 = sshll.u32 %s177_s8, 1 }
  0x3b   : > { %1980 = vmatpush1.bf16.msra.mxu0 %v1979_v8  ;;  %s1864_s20 = sshll.u32 %s3705_s19, 3  ;;  %2112 = vmatpush1.bf16.msra.mxu1 %v1979_v8  ;;  %v828_v18 = vld [vmem:[#allocation2 + $0xa8] sm:$0xff]  ;;  %v827_v20 = vld [vmem:[#allocation2 + $0xa0] sm:$0xff]  ;;  %v1987_v51 = vpack.c.bf16 %v218_v49, %v214_v48  ;;  %v223_v59 = vld [vmem:[#allocation2 + $0x58] sm:$0xff]  ;;  %s179_s11 = scalar_lea.vmem [#allocation5], %s1863_s9 }
  0x3c   : > { %1982 = vmatprep.subr.bf16.mxu0 %v1981_v9  ;;  %2110 = vmatprep.subr.bf16.mxu1 %v1981_v9  ;;  %s2438_s26 = scalar_lea.vmem %s3618_s0, %s1864_s20  ;;  %v830_v19 = vld [vmem:[#allocation2 + $0xc8] sm:$0xff]  ;;  %v829_v22 = vld [vmem:[#allocation2 + $0xc0] sm:$0xff]  ;;  %v227_v61 = vld [vmem:[#allocation2 + $0x78] sm:$0xff]  ;;  %s1786_s17 = sshll.u32 %s179_s11, 4  ;;  %s3578_s17 = int_to_ptr.vmem [resolvable:$true] %s1786_s17 }
  0x3d   : > { %v2441_v15 = vld [vmem:[%s2438_s26] sm:$0xff]  ;;  %v2447_v17 = vld [vmem:[%s2438_s26 + $0x8] sm:$0xff]  ;;  %v1993_v21 = vpack.c.bf16 %v830_v19, %v828_v18  ;;  %v1995_v26 = vpack.c.bf16 %v829_v22, %v827_v20  ;;  %v2464_v35 = vld [vmem:[%s2438_s26 + $0x10] sm:$0xff]  ;;  %v1989_v4 = vpack.c.bf16 %v227_v61, %v223_v59  ;;  %s3576_s24 = scalar_lea.hbm %s3621_s3, %s1976_s10  ;;  %s1772_s25 = scalar_lea.sflag [#allocation4], %s177_s8 }
  0x3e   : > { %v2444_v16 = vld [vmem:[%s2438_s26 + $0x80] sm:$0xff]  ;;  %v832_v23 = vld [vmem:[#allocation2 + $0xe8] sm:$0xff]  ;;  %v2468_v36 = vld [vmem:[%s2438_s26 + $0x90] sm:$0xff]  ;;  %p3698_p9 = scmp.ne.s32.totalorder %s3627_s22, 0  ;;  %s2328_s16 = smov [#allocation5]  }
  0x3f   : > { %1984 = vmatpush1.bf16.msra.mxu0 %v1983_v12  ;;  %2113 = vmatpush1.bf16.msra.mxu1 %v1983_v12  ;;  %v834_v24 = vld [vmem:[#allocation2 + $0x108] sm:$0xff]  ;;  %v831_v27 = vld [vmem:[#allocation2 + $0xe0] sm:$0xff]  ;;  %v2471_v38 = vld [vmem:[%s2438_s26 + $0x18] sm:$0xff]  ;;  %s2256_s27 = sshll.u32 %s2328_s16, 4  ;;  %s2257_s27 = int_to_ptr.vmem [resolvable:$false] %s2256_s27 }
  0x40   : > { %341 = vmatprep.subr.mxu0 %v229_v13  ;;  %2111 = vmatprep.subr.mxu1 %v229_v13  ;;  %v2456_v25 = vld [vmem:[%s2438_s26 + $0x88] sm:$0xff]  ;;  %v833_v28 = vld [vmem:[#allocation2 + $0x100] sm:$0xff]  ;;  %v1997_v29 = vpack.c.bf16 %v834_v24, %v832_v23  ;;  %v2480_v46 = vld [vmem:[%s2438_s26 + $0x98] sm:$0xff]  ;;  %s2258_s28 = scalar_lea.vmem %s2257_s27, 64  ;;  %p2259_p2 = scmp.lt.s32.totalorder %s3578_s17, %s2257_s27 }
  0x41   : > { %v1999_v30 = vpack.c.bf16 %v833_v28, %v831_v27  ;;  %v836_v31 = vld [vmem:[#allocation2 + $0x128] sm:$0xff]  ;;  %v835_v33 = vld [vmem:[#allocation2 + $0x120] sm:$0xff]  ;;  %v222_v62 = vld [vmem:[#allocation2 + $0x50] sm:$0xff] }
  0x42   : > { %v838_v32 = vld [vmem:[#allocation2 + $0x148] sm:$0xff]  ;;  %v837_v34 = vld [vmem:[#allocation2 + $0x140] sm:$0xff]  ;;  %v226_v63 = vld [vmem:[#allocation2 + $0x70] sm:$0xff] }
  0x43   : > { %342 = vmatpush1.msra.mxu0 %v228_v14  ;;  %2114 = vmatpush1.msra.mxu1 %v228_v14  ;;  %v2001_v37 = vpack.c.bf16 %v838_v32, %v836_v31  ;;  %v2003_v39 = vpack.c.bf16 %v837_v34, %v835_v33  ;;  %v840_v40 = vld [vmem:[#allocation2 + $0x168] sm:$0xff]  ;;  %v839_v43 = vld [vmem:[#allocation2 + $0x160] sm:$0xff]  ;;  %v1991_v5 = vpack.c.bf16 %v226_v63, %v222_v62  ;;  %v231_v14 = vld [vmem:[#allocation2 + $0x98] sm:$0xff] }
  0x44   : > { %1865 = vmatmul.mubr.msk.f32.vlgmr.msra.gmra.mrb[0].mxu0 %vm254_vm0, %v2441_v15  ;;  %1881 = vmatmul.mubr.msk.f32.vlgmr.msra.gmra.mrb[0].mxu1 %vm254_vm0, %v2444_v16  ;;  %v842_v41 = vld [vmem:[#allocation2 + $0x188] sm:$0xff]  ;;  %v841_v44 = vld [vmem:[#allocation2 + $0x180] sm:$0xff]  ;;  %v230_v20 = vld [vmem:[#allocation2 + $0x90] sm:$0xff] }
  0x45   : > { %403 = vmatprep.mubr.f32.mxu0 %v2323_v0  ;;  %499 = vmatprep.mubr.f32.mxu1 %v2323_v0  ;;  %v2005_v50 = vpack.c.bf16 %v842_v41, %v840_v40  ;;  %v2007_v52 = vpack.c.bf16 %v841_v44, %v839_v43  ;;  %v844_v53 = vld [vmem:[#allocation2 + $0x1a8] sm:$0xff]  ;;  %v843_v55 = vld [vmem:[#allocation2 + $0x1a0] sm:$0xff]  ;;  %v2516_v22 = vld [vmem:[%s2438_s26 + $0xb0] sm:$0xff] }
  0x46   : > { %1994 = vmatprep.subr.bf16.mxu0 %v1993_v21  ;;  %v846_v54 = vld [vmem:[#allocation2 + $0x1c8] sm:$0xff]  ;;  %1986 = vmatprep.subr.bf16.mxu1 %v1985_v47  ;;  %v845_v56 = vld [vmem:[#allocation2 + $0x1c0] sm:$0xff]  ;;  %v2512_v21 = vld [vmem:[%s2438_s26 + $0x30] sm:$0xff] }
  0x47   : > { %1996 = vmatpush1.bf16.msra.mxu0 %v1995_v26  ;;  %v2488_v57 = vld [vmem:[%s2438_s26 + $0x20] sm:$0xff]  ;;  %v2009_v60 = vpack.c.bf16 %v846_v54, %v844_v53  ;;  %1988 = vmatpush1.bf16.msra.mxu1 %v1987_v51  ;;  %v2011_v1 = vpack.c.bf16 %v845_v56, %v843_v55  ;;  %v848_v2 = vld [vmem:[#allocation2 + $0x1e8] sm:$0xff]  ;;  %v2528_v31 = vld [vmem:[%s2438_s26 + $0xb8] sm:$0xff] }
  0x48   : > { %1866 = vmatmul.mubr.msk.f32.gmra.mrb[2].mxu0 %vm254_vm0, %v2447_v17  ;;  %1882 = vmatmul.mubr.msk.f32.gmra.mrb[2].mxu1 %vm254_vm0, %v2456_v25  ;;  %v2492_v58 = vld [vmem:[%s2438_s26 + $0xa0] sm:$0xff]  ;;  %v850_v3 = vld [vmem:[#allocation2 + $0x208] sm:$0xff]  ;;  %v2560_v61 = vld [vmem:[%s2438_s26 + $0x50] sm:$0xff] }
  0x49   : > { %409 = vmatprep.mubr.f32.mxu0 %v2323_v0  ;;  %505 = vmatprep.mubr.f32.mxu1 %v2323_v0  ;;  %v847_v6 = vld [vmem:[#allocation2 + $0x1e0] sm:$0xff]  ;;  %v2500_v8 = vld [vmem:[%s2438_s26 + $0x28] sm:$0xff]  ;;  %v2013_v10 = vpack.c.bf16 %v850_v3, %v848_v2  ;;  %vm3310_vm5 = vmpackc.low %vm1595_vm4, %vm1595_vm4 }
  0x4a   : > { %1998 = vmatprep.subr.bf16.mxu0 %v1997_v29  ;;  %v849_v7 = vld [vmem:[#allocation2 + $0x200] sm:$0xff]  ;;  %v2504_v9 = vld [vmem:[%s2438_s26 + $0xa8] sm:$0xff]  ;;  %1990 = vmatprep.subr.bf16.mxu1 %v1989_v4 }
  0x4b   : > { %2000 = vmatpush1.bf16.msra.mxu0 %v1999_v30  ;;  %v2015_v11 = vpack.c.bf16 %v849_v7, %v847_v6  ;;  %v852_v12 = vld [vmem:[#allocation2 + $0x228] sm:$0xff]  ;;  %1992 = vmatpush1.bf16.msra.mxu1 %v1991_v5  ;;  %v851_v18 = vld [vmem:[#allocation2 + $0x220] sm:$0xff]  ;;  %v2524_v30 = vld [vmem:[%s2438_s26 + $0x38] sm:$0xff] }
  0x4c   : > { %1867 = vmatmul.mubr.msk.f32.gmra.mrb[4].mxu0 %vm254_vm0, %v2464_v35  ;;  %1883 = vmatmul.mubr.msk.f32.gmra.mrb[4].mxu1 %vm254_vm0, %v2468_v36  ;;  %v854_v13 = vld [vmem:[#allocation2 + $0x248] sm:$0xff]  ;;  %v853_v19 = vld [vmem:[#allocation2 + $0x240] sm:$0xff]  ;;  %v2567_v5 = vld [vmem:[%s2438_s26 + $0x58] sm:$0xff] }
  0x4d   : > { %415 = vmatprep.mubr.f32.mxu0 %v2323_v0  ;;  %511 = vmatprep.mubr.f32.mxu1 %v2323_v0  ;;  %v2017_v23 = vpack.c.bf16 %v854_v13, %v852_v12  ;;  %v2019_v24 = vpack.c.bf16 %v853_v19, %v851_v18  ;;  %v856_v26 = vld [vmem:[#allocation2 + $0x268] sm:$0xff]  ;;  %v855_v28 = vld [vmem:[#allocation2 + $0x260] sm:$0xff] }
  0x4e   : > { %2002 = vmatprep.subr.bf16.mxu0 %v2001_v37  ;;  %562 = vmatprep.subr.mxu1 %v231_v14  ;;  %v858_v27 = vld [vmem:[#allocation2 + $0x288] sm:$0xff]  ;;  %v857_v29 = vld [vmem:[#allocation2 + $0x280] sm:$0xff] }
  0x4f   : > { %2004 = vmatpush1.bf16.msra.mxu0 %v2003_v39  ;;  %563 = vmatpush1.msra.mxu1 %v230_v20  ;;  %v2021_v32 = vpack.c.bf16 %v858_v27, %v856_v26  ;;  %v2023_v33 = vpack.c.bf16 %v857_v29, %v855_v28  ;;  %v860_v34 = vld [vmem:[#allocation2 + $0x2a8] sm:$0xff]  ;;  %v859_v39 = vld [vmem:[#allocation2 + $0x2a0] sm:$0xff] }
  0x50   : > { %1868 = vmatmul.mubr.msk.f32.gmra.mrb[6].mxu0 %vm254_vm0, %v2471_v38  ;;  %1884 = vmatmul.mubr.msk.f32.gmra.mrb[6].mxu1 %vm254_vm0, %v2480_v46  ;;  %v862_v37 = vld [vmem:[#allocation2 + $0x2c8] sm:$0xff]  ;;  %v861_v40 = vld [vmem:[#allocation2 + $0x2c0] sm:$0xff] }
  0x51   : > { %421 = vmatprep.mubr.f32.mxu0 %v2323_v0  ;;  %517 = vmatprep.mubr.f32.mxu1 %v2323_v0  ;;  %v2536_v41 = vld [vmem:[%s2438_s26 + $0x40] sm:$0xff]  ;;  %v2025_v43 = vpack.c.bf16 %v862_v37, %v860_v34  ;;  %v864_v44 = vld [vmem:[#allocation2 + $0x2e8] sm:$0xff]  ;;  %v2027_v47 = vpack.c.bf16 %v861_v40, %v859_v39 }
  0x52   : > { %2006 = vmatprep.subr.bf16.mxu0 %v2005_v50  ;;  %v2540_v42 = vld [vmem:[%s2438_s26 + $0xc0] sm:$0xff]  ;;  %v866_v45 = vld [vmem:[#allocation2 + $0x308] sm:$0xff] }
  0x53   : > { %2008 = vmatpush1.bf16.msra.mxu0 %v2007_v52  ;;  %v2545_v48 = vld [vmem:[%s2438_s26 + $0x48] sm:$0xff]  ;;  %v863_v49 = vld [vmem:[#allocation2 + $0x2e0] sm:$0xff]  ;;  %v2029_v52 = vpack.c.bf16 %v866_v45, %v864_v44 }
  0x54   : > { %1869 = vmatmul.mubr.msk.f32.gmra.mrb[8].mxu0 %vm254_vm0, %v2488_v57  ;;  %1885 = vmatmul.mubr.msk.f32.gmra.mrb[8].mxu1 %vm254_vm0, %v2492_v58  ;;  %v865_v50 = vld [vmem:[#allocation2 + $0x300] sm:$0xff]  ;;  %v2552_v51 = vld [vmem:[%s2438_s26 + $0xc8] sm:$0xff] }
  0x55   : > { %427 = vmatprep.mubr.f32.mxu0 %v2323_v0  ;;  %523 = vmatprep.mubr.f32.mxu1 %v2323_v0  ;;  %v868_v53 = vld [vmem:[#allocation2 + $0x328] sm:$0xff]  ;;  %v2031_v55 = vpack.c.bf16 %v865_v50, %v863_v49  ;;  %v867_v59 = vld [vmem:[#allocation2 + $0x320] sm:$0xff] }
  0x56   : > { %2010 = vmatprep.subr.bf16.mxu0 %v2009_v60  ;;  %v870_v54 = vld [vmem:[#allocation2 + $0x348] sm:$0xff]  ;;  %v869_v60 = vld [vmem:[#allocation2 + $0x340] sm:$0xff] }
  0x57   : > { %2012 = vmatpush1.bf16.msra.mxu0 %v2011_v1  ;;  %v2033_v56 = vpack.c.bf16 %v870_v54, %v868_v53  ;;  %v872_v62 = vld [vmem:[#allocation2 + $0x368] sm:$0xff]  ;;  %v2035_v1 = vpack.c.bf16 %v869_v60, %v867_v59  ;;  %v871_v3 = vld [vmem:[#allocation2 + $0x360] sm:$0xff] }
  0x58   : > { %1870 = vmatmul.mubr.msk.f32.gmra.mrb[10].mxu0 %vm254_vm0, %v2500_v8  ;;  %1886 = vmatmul.mubr.msk.f32.gmra.mrb[10].mxu1 %vm254_vm0, %v2504_v9  ;;  %v874_v63 = vld [vmem:[#allocation2 + $0x388] sm:$0xff]  ;;  %v873_v4 = vld [vmem:[#allocation2 + $0x380] sm:$0xff] }
  0x59   : > { %433 = vmatprep.mubr.f32.mxu0 %v2323_v0  ;;  %529 = vmatprep.mubr.f32.mxu1 %v2323_v0  ;;  %v2037_v2 = vpack.c.bf16 %v874_v63, %v872_v62  ;;  %v876_v6 = vld [vmem:[#allocation2 + $0x3a8] sm:$0xff]  ;;  %v875_v12 = vld [vmem:[#allocation2 + $0x3a0] sm:$0xff] }
  0x5a   : > { %2014 = vmatprep.subr.bf16.mxu0 %v2013_v10  ;;  %v878_v7 = vld [vmem:[#allocation2 + $0x3c8] sm:$0xff]  ;;  %v2039_v10 = vpack.c.bf16 %v873_v4, %v871_v3  ;;  %v877_v13 = vld [vmem:[#allocation2 + $0x3c0] sm:$0xff] }
  0x5b   : > { %2016 = vmatpush1.bf16.msra.mxu0 %v2015_v11  ;;  %v2041_v11 = vpack.c.bf16 %v878_v7, %v876_v6  ;;  %v198_v14 = vld [vmem:[%s2438_s26 + $0x60] sm:$0xff]  ;;  %v880_v18 = vld [vmem:[#allocation2 + $0x3e8] sm:$0xff] }
  0x5c   : > { %1871 = vmatmul.mubr.msk.f32.gmra.mrb[12].mxu0 %vm254_vm0, %v2512_v21  ;;  %1887 = vmatmul.mubr.msk.f32.gmra.mrb[12].mxu1 %vm254_vm0, %v2516_v22  ;;  %v882_v19 = vld [vmem:[#allocation2 + $0x408] sm:$0xff]  ;;  %v887_v34 = vld [vmem:[#allocation2 + $0x460] sm:$0xff] }
  0x5d   : > { %439 = vmatprep.mubr.f32.mxu0 %v2323_v0  ;;  %535 = vmatprep.mubr.f32.mxu1 %v2323_v0  ;;  %v2045_v20 = vpack.c.bf16 %v882_v19, %v880_v18  ;;  %v199_v26 = vld [vmem:[%s2438_s26 + $0x68] sm:$0xff]  ;;  %v889_v37 = vld [vmem:[#allocation2 + $0x480] sm:$0xff] }
  0x5e   : > { %2018 = vmatprep.subr.bf16.mxu0 %v2017_v23  ;;  %v879_v23 = vld [vmem:[#allocation2 + $0x3e0] sm:$0xff]  ;;  %v884_v27 = vld [vmem:[#allocation2 + $0x428] sm:$0xff]  ;;  %v2055_v39 = vpack.c.bf16 %v889_v37, %v887_v34 }
  0x5f   : > { %2020 = vmatpush1.bf16.msra.mxu0 %v2019_v24  ;;  %v881_v24 = vld [vmem:[#allocation2 + $0x400] sm:$0xff]  ;;  %v886_v28 = vld [vmem:[#allocation2 + $0x448] sm:$0xff] }
  0x60   : > { %1872 = vmatmul.mubr.msk.f32.gmra.mrb[14].mxu0 %vm254_vm0, %v2524_v30  ;;  %1888 = vmatmul.mubr.msk.f32.gmra.mrb[14].mxu1 %vm254_vm0, %v2528_v31  ;;  %v2049_v29 = vpack.c.bf16 %v886_v28, %v884_v27 }
  0x61   : > { %445 = vmatprep.mubr.f32.mxu0 %v2323_v0  ;;  %541 = vmatprep.mubr.f32.mxu1 %v2323_v0 }
  0x62   : > { %2022 = vmatprep.subr.bf16.mxu0 %v2021_v32  ;;  %v200_v32 = vld [vmem:[%s2438_s26 + $0x70] sm:$0xff] }
  0x63   : > { %2024 = vmatpush1.bf16.msra.mxu0 %v2023_v33 }
  0x64   : > { %1873 = vmatmul.mubr.msk.f32.gmra.mrb[16].mxu0 %vm254_vm0, %v2536_v41  ;;  %1889 = vmatmul.mubr.msk.f32.gmra.mrb[16].mxu1 %vm254_vm0, %v2540_v42 }
  0x65   : > { %451 = vmatprep.mubr.f32.mxu0 %v2323_v0  ;;  %547 = vmatprep.mubr.f32.mxu1 %v2323_v0 }
  0x66   : > { %2026 = vmatprep.subr.bf16.mxu0 %v2025_v43 }
  0x67   : > { %2028 = vmatpush1.bf16.msra.mxu0 %v2027_v47 }
  0x68   : > { %1874 = vmatmul.mubr.msk.f32.gmra.mrb[18].mxu0 %vm254_vm0, %v2545_v48  ;;  %1890 = vmatmul.mubr.msk.f32.gmra.mrb[18].mxu1 %vm254_vm0, %v2552_v51 }
  0x69   : > { %457 = vmatprep.mubr.f32.mxu0 %v2323_v0  ;;  %2030 = vmatprep.subr.bf16.mxu0 %v2029_v52 }
  0x6a   : > { %618 = vmatprep.mubr.f32.mxu1 %v2323_v0 }
  0x6b   : > { %2032 = vmatpush1.bf16.msra.mxu0 %v2031_v55 }
  0x6c   : > { %1875 = vmatmul.mubr.msk.f32.gmra.mrb[20].mxu0 %vm254_vm0, %v2560_v61  ;;  %2034 = vmatprep.subr.bf16.mxu0 %v2033_v56 }
  0x6d   : > { %463 = vmatprep.mubr.f32.mxu0 %v2323_v0  ;;  %1891 = vmatmul.mubr.msk.f32.vlgmr.msra.gmra.mrb[20].mxu1 %vm254_vm0, %v2441_v15  ;;  %v2043_v15 = vpack.c.bf16 %v877_v13, %v875_v12 }
  0x6e   : > { %624 = vmatprep.mubr.f32.mxu1 %v2323_v0 }
  0x6f   : > { %2036 = vmatpush1.bf16.msra.mxu0 %v2035_v1 }
  0x70   : > { %1876 = vmatmul.mubr.msk.f32.gmra.mrb[22].mxu0 %vm254_vm0, %v2567_v5  ;;  %2038 = vmatprep.subr.bf16.mxu0 %v2037_v2 }
  0x71   : > { %469 = vmatprep.mubr.f32.mxu0 %v2323_v0  ;;  %1892 = vmatmul.mubr.msk.f32.gmra.mrb[22].mxu1 %vm254_vm0, %v2447_v17  ;;  %v2047_v17 = vpack.c.bf16 %v881_v24, %v879_v23 }
  0x72   : > { %630 = vmatprep.mubr.f32.mxu1 %v2323_v0 }
  0x73   : > { %2040 = vmatpush1.bf16.msra.mxu0 %v2039_v10 }
  0x74   : > { %1877 = vmatmul.mubr.msk.f32.gmra.mrb[24].mxu0 %vm254_vm0, %v198_v14  ;;  %2042 = vmatprep.subr.bf16.mxu0 %v2041_v11 }
  0x75   : > { %475 = vmatprep.mubr.f32.mxu0 %v2323_v0  ;;  %1893 = vmatmul.mubr.msk.f32.gmra.mrb[24].mxu1 %vm254_vm0, %v2464_v35  ;;  %v201_v35 = vld [vmem:[%s2438_s26 + $0x78] sm:$0xff]  ;;  %s2252_s26 = scalar_lea.vmem %s3578_s17, 32 }
  0x76   : > { %636 = vmatprep.mubr.f32.mxu1 %v2323_v0  ;;  %p2253_p6 = scmp.ne.s32.totalorder %s3578_s17, %s2252_s26  ;;  %p2260_p3 = scmp.lt.s32.totalorder %s2258_s28, %s2252_s26 }
  0x77   : > { %2044 = vmatpush1.bf16.msra.mxu0 %v2043_v15 }
  0x78   : > { %1878 = vmatmul.mubr.msk.f32.gmra.mrb[26].mxu0 %vm254_vm0, %v199_v26  ;;  %2046 = vmatprep.subr.bf16.mxu0 %v2045_v20  ;;  %p2254_p10 = pnand %p2253_p6, %p3698_p9  ;;  %p2261_p4 = por %p2260_p3, %p2259_p2 }
  0x79   : > { %481 = vmatprep.mubr.f32.mxu0 %v2323_v0  ;;  %1894 = vmatmul.mubr.msk.f32.gmra.mrb[26].mxu1 %vm254_vm0, %v2471_v38  ;;  %v883_v38 = vld [vmem:[#allocation2 + $0x420] sm:$0xff] }
  0x7a   : > { %642 = vmatprep.mubr.f32.mxu1 %v2323_v0  ;;  %p2255_p12 = pneg %p2254_p10 }
  0x7b   : > { %2048 = vmatpush1.bf16.msra.mxu0 %v2047_v17 }
  0x7c   : > { %1879 = vmatmul.mubr.msk.f32.gmra.mrb[28].mxu0 %vm254_vm0, %v200_v32  ;;  %2050 = vmatprep.subr.bf16.mxu0 %v2049_v29  ;;  %p2262_p7 = pnand %p2261_p4, %p2255_p12 }
  0x7d   : > { %487 = vmatprep.mubr.f32.mxu0 %v2323_v0  ;;  %1895 = vmatmul.mubr.msk.f32.gmra.mrb[28].mxu1 %vm254_vm0, %v2488_v57  ;;  %v885_v57 = vld [vmem:[#allocation2 + $0x440] sm:$0xff] }
  0x7e   : > { %648 = vmatprep.mubr.f32.mxu1 %v2323_v0 }
  0x80   : > { %1880 = vmatmul.mubr.msk.f32.gmra.mrb[30].mxu0 %vm254_vm0, %v201_v35 }
  0x81   : > { %1896 = vmatmul.mubr.msk.f32.gmra.mrb[30].mxu1 %vm254_vm0, %v2500_v8  ;;  %v2051_v8 = vpack.c.bf16 %v885_v57, %v883_v38 }
  0x82   : > { %654 = vmatprep.mubr.f32.mxu1 %v2323_v0 }
  0x83   : > { %2052 = vmatpush1.bf16.msra.mxu0 %v2051_v8 }
  0x85   : > { %1897 = vmatmul.mubr.msk.f32.gmra.mrb[32].mxu1 %vm254_vm0, %v2512_v21  ;;  %v888_v21 = vld [vmem:[#allocation2 + $0x468] sm:$0xff] }
  0x86   : > { %660 = vmatprep.mubr.f32.mxu1 %v2323_v0 }
  0x89   : > { %1898 = vmatmul.mubr.msk.f32.gmra.mrb[34].mxu1 %vm254_vm0, %v2524_v30  ;;  %v890_v30 = vld [vmem:[#allocation2 + $0x488] sm:$0xff] }
  0x8a   : > { %666 = vmatprep.mubr.f32.mxu1 %v2323_v0  ;;  %v2053_v33 = vpack.c.bf16 %v890_v30, %v888_v21 }
  0x8c   : > { %2054 = vmatprep.subr.bf16.mxu0 %v2053_v33 }
  0x8d   : > { %1899 = vmatmul.mubr.msk.f32.gmra.mrb[36].mxu1 %vm254_vm0, %v2536_v41  ;;  %2056 = vmatpush1.bf16.msra.mxu0 %v2055_v39 }
  0x8e   : > { %672 = vmatprep.mubr.f32.mxu1 %v2323_v0 }
  0x91   : > { %1900 = vmatmul.mubr.msk.f32.gmra.mrb[38].mxu1 %vm254_vm0, %v2545_v48 }
  0x92   : > { %678 = vmatprep.mubr.f32.mxu1 %v2323_v0 }
  0x95   : > { %1901 = vmatmul.mubr.msk.f32.gmra.mrb[40].mxu1 %vm254_vm0, %v2560_v61 }
  0x96   : > { %684 = vmatprep.mubr.f32.mxu1 %v2323_v0 }
  0x99   : > { %1902 = vmatmul.mubr.msk.f32.gmra.mrb[42].mxu1 %vm254_vm0, %v2567_v5 }
  0x9a   : > { %690 = vmatprep.mubr.f32.mxu1 %v2323_v0 }
  0x9d   : > { %1903 = vmatmul.mubr.msk.f32.gmra.mrb[44].mxu1 %vm254_vm0, %v198_v14 }
  0x9e   : > { %696 = vmatprep.mubr.f32.mxu1 %v2323_v0 }
  0xa1   : > { %1904 = vmatmul.mubr.msk.f32.gmra.mrb[46].mxu1 %vm254_vm0, %v199_v26 }
  0xa2   : > { %702 = vmatprep.mubr.f32.mxu1 %v2323_v0 }
  0xa5   : > { %1905 = vmatmul.mubr.msk.f32.gmra.mrb[48].mxu1 %vm254_vm0, %v200_v32 }
  0xa6   : > { %708 = vmatprep.mubr.f32.mxu1 %v2323_v0 }
  0xa9   : > { %1906 = vmatmul.mubr.msk.f32.gmra.mrb[50].mxu1 %vm254_vm0, %v201_v35 }
  0xaa   : > { %714 = vmatprep.mubr.f32.mxu1 %v2323_v0 }
  0xad   : > { %1907 = vmatmul.mubr.msk.f32.gmra.mrb[52].mxu1 %vm254_vm0, %v2444_v16  ;;  %v3625_v16 = vlaneseq }
  0xae   : > { %720 = vmatprep.mubr.f32.mxu1 %v2323_v0 }
  0xb1   : > { %1908 = vmatmul.mubr.msk.f32.gmra.mrb[54].mxu1 %vm254_vm0, %v2456_v25  ;;  %v2658_v25 = vshrl.u32 %v3625_v16, 7 }
  0xb2   : > { %726 = vmatprep.mubr.f32.mxu1 %v2323_v0 }
  0xb5   : > { %1909 = vmatmul.mubr.msk.f32.gmra.mrb[56].mxu1 %vm254_vm0, %v2468_v36  ;;  %v236_v36 = vsub.s32 0, %v2658_v25 }
  0xb6   : > { %732 = vmatprep.mubr.f32.mxu1 %v2323_v0 }
  0xb9   : > { %1910 = vmatmul.mubr.msk.f32.gmra.mrb[58].mxu1 %vm254_vm0, %v2480_v46  ;;  %v2664_v46 = vld [vmem:[%s3620_s2] ss:$8 sm:$0xf] }
  0xba   : > { %738 = vmatprep.mubr.f32.mxu1 %v2323_v0 }
  0xbd   : > { %1911 = vmatmul.mubr.msk.f32.gmra.mrb[60].mxu1 %vm254_vm0, %v2492_v58  ;;  %v3626_v58 = vsub.s32 1, %v2658_v25 }
  0xbe   : > { %744 = vmatprep.mubr.f32.mxu1 %v2323_v0 }
  0xc1   : > { %1912 = vmatmul.mubr.msk.f32.gmra.mrb[62].mxu1 %vm254_vm0, %v2504_v9  ;;  %v2670_v9 = vrot.slane %v2664_v46, %v236_v36 }
  0xc2   : > { %750 = vmatprep.mubr.f32.mxu1 %v2323_v0 }
  0xc5   : > { %1913 = vmatmul.mubr.msk.f32.gmra.mrb[64].mxu1 %vm254_vm0, %v2516_v22 }
  0xc6   : > { %756 = vmatprep.mubr.f32.mxu1 %v2323_v0 }
  0xc9   : > { %1914 = vmatmul.mubr.msk.f32.gmra.mrb[66].mxu1 %vm254_vm0, %v2528_v31 }
  0xca   : > { %762 = vmatprep.mubr.f32.mxu1 %v2323_v0 }
  0xcd   : > { %1915 = vmatmul.mubr.msk.f32.gmra.mrb[68].mxu1 %vm254_vm0, %v2540_v42 }
  0xce   : > { %768 = vmatprep.mubr.f32.mxu1 %v2323_v0 }
  0xd1   : > { %1916 = vmatmul.mubr.msk.f32.gmra.mrb[70].mxu1 %vm254_vm0, %v2552_v51 }
  0xd2   : > { %1741 = vmatprep.mubr.f32.mxu1 %v2323_v0  ;;  %v2675_v0 = vrot.slane %v2664_v46, %v3626_v58 }
 0x117   : > { %v399_v22 = vpop.f32.mrb[0].mxu0  ;;  %v495_v31 = vpop.f32.mrb[0].mxu1 }
 0x118   : > { %v400_v40 = vadd.f32 %v399_v22, %v2670_v9  ;;  %v401_v41 = vpop.f32.mrb[1].mxu0  ;;  %v2679_v42 = vadd.f32 %v495_v31, %v2670_v9  ;;  %v2681_v43 = vpop.f32.mrb[1].mxu1 }
 0x119   : > { %v402_v44 = vadd.f32 %v401_v41, %v2675_v0 }
 0x11a   : > { %v775_v49 = vmax.f32 %v400_v40, 0.0 }
 0x11b   : > { %v776_v45 = vmax.f32 %v402_v44, 0.0  ;;  %v405_v47 = vpop.f32.mrb[2].mxu0  ;;  %v501_v48 = vpop.f32.mrb[2].mxu1 }
 0x11c   : > { %v406_v50 = vadd.f32 %v405_v47, %v2670_v9  ;;  %v407_v51 = vpop.f32.mrb[3].mxu0  ;;  %v2686_v52 = vadd.f32 %v501_v48, %v2670_v9  ;;  %v503_v53 = vpop.f32.mrb[3].mxu1 }
 0x11d   : > { %v408_v54 = vadd.f32 %v407_v51, %v2675_v0  ;;  %968 = vmatprep.mubr.f32.mxu0 %v776_v45  ;;  %v2690_v55 = vadd.f32 %v503_v53, %v2675_v0 }
 0x11e   : > { %969 = vmatmul.mubr.f32.vlgmr.msra.gmra.mrb[32].mxu0 %v775_v49  ;;  %v777_v61 = vmax.f32 %v406_v50, 0.0 }
 0x11f   : > { %v778_v56 = vmax.f32 %v408_v54, 0.0  ;;  %v411_v59 = vpop.f32.mrb[4].mxu0  ;;  %v507_v60 = vpop.f32.mrb[4].mxu1 }
 0x120   : > { %v412_v62 = vadd.f32 %v411_v59, %v2670_v9  ;;  %v413_v63 = vpop.f32.mrb[5].mxu0  ;;  %v2694_v1 = vadd.f32 %v507_v60, %v2670_v9  ;;  %v509_v2 = vpop.f32.mrb[5].mxu1 }
 0x121   : > { %v414_v3 = vadd.f32 %v413_v63, %v2675_v0  ;;  %974 = vmatprep.mubr.f32.mxu0 %v778_v56  ;;  %v2698_v4 = vadd.f32 %v509_v2, %v2675_v0 }
 0x122   : > { %975 = vmatmul.mubr.f32.gmra.mrb[34].mxu0 %v777_v61  ;;  %v779_v10 = vmax.f32 %v412_v62, 0.0 }
 0x123   : > { %v780_v5 = vmax.f32 %v414_v3, 0.0  ;;  %v417_v6 = vpop.f32.mrb[6].mxu0  ;;  %v513_v7 = vpop.f32.mrb[6].mxu1 }
 0x124   : > { %v418_v11 = vadd.f32 %v417_v6, %v2670_v9  ;;  %v419_v12 = vpop.f32.mrb[7].mxu0  ;;  %v2702_v13 = vadd.f32 %v513_v7, %v2670_v9  ;;  %v515_v14 = vpop.f32.mrb[7].mxu1 }
 0x125   : > { %v420_v18 = vadd.f32 %v419_v12, %v2675_v0  ;;  %980 = vmatprep.mubr.f32.mxu0 %v780_v5  ;;  %v2706_v19 = vadd.f32 %v515_v14, %v2675_v0 }
 0x126   : > { %981 = vmatmul.mubr.f32.gmra.mrb[36].mxu0 %v779_v10  ;;  %v781_v24 = vmax.f32 %v418_v11, 0.0 }
 0x127   : > { %v782_v15 = vmax.f32 %v420_v18, 0.0  ;;  %v423_v20 = vpop.f32.mrb[8].mxu0  ;;  %v519_v23 = vpop.f32.mrb[8].mxu1 }
 0x128   : > { %v424_v26 = vadd.f32 %v423_v20, %v2670_v9  ;;  %v425_v27 = vpop.f32.mrb[9].mxu0  ;;  %v2710_v28 = vadd.f32 %v519_v23, %v2670_v9  ;;  %v521_v17 = vpop.f32.mrb[9].mxu1 }
 0x129   : > { %v426_v29 = vadd.f32 %v425_v27, %v2675_v0  ;;  %986 = vmatprep.mubr.f32.mxu0 %v782_v15  ;;  %v2714_v32 = vadd.f32 %v521_v17, %v2675_v0 }
 0x12a   : > { %987 = vmatmul.mubr.f32.gmra.mrb[38].mxu0 %v781_v24  ;;  %v783_v8 = vmax.f32 %v424_v26, 0.0 }
 0x12b   : > { %v784_v35 = vmax.f32 %v426_v29, 0.0  ;;  %v429_v38 = vpop.f32.mrb[10].mxu0  ;;  %v525_v57 = vpop.f32.mrb[10].mxu1 }
 0x12c   : > { %v430_v21 = vadd.f32 %v429_v38, %v2670_v9  ;;  %v431_v30 = vpop.f32.mrb[11].mxu0  ;;  %v2718_v33 = vadd.f32 %v525_v57, %v2670_v9  ;;  %v527_v34 = vpop.f32.mrb[11].mxu1 }
 0x12d   : > { %v432_v37 = vadd.f32 %v431_v30, %v2675_v0  ;;  %992 = vmatprep.mubr.f32.mxu0 %v784_v35  ;;  %v2722_v39 = vadd.f32 %v527_v34, %v2675_v0 }
 0x12e   : > { %993 = vmatmul.mubr.f32.gmra.mrb[40].mxu0 %v783_v8  ;;  %v785_v41 = vmax.f32 %v430_v21, 0.0 }
 0x12f   : > { %v786_v22 = vmax.f32 %v432_v37, 0.0  ;;  %v435_v31 = vpop.f32.mrb[12].mxu0  ;;  %v531_v40 = vpop.f32.mrb[12].mxu1 }
 0x130   : > { %v436_v44 = vadd.f32 %v435_v31, %v2670_v9  ;;  %v437_v45 = vpop.f32.mrb[13].mxu0  ;;  %v2726_v47 = vadd.f32 %v531_v40, %v2670_v9  ;;  %v533_v48 = vpop.f32.mrb[13].mxu1 }
 0x131   : > { %v438_v49 = vadd.f32 %v437_v45, %v2675_v0  ;;  %998 = vmatprep.mubr.f32.mxu0 %v786_v22  ;;  %v2730_v50 = vadd.f32 %v533_v48, %v2675_v0 }
 0x132   : > { %999 = vmatmul.mubr.f32.gmra.mrb[42].mxu0 %v785_v41  ;;  %v787_v56 = vmax.f32 %v436_v44, 0.0 }
 0x133   : > { %v788_v51 = vmax.f32 %v438_v49, 0.0  ;;  %v441_v53 = vpop.f32.mrb[14].mxu0  ;;  %v537_v54 = vpop.f32.mrb[14].mxu1 }
 0x134   : > { %v442_v59 = vadd.f32 %v441_v53, %v2670_v9  ;;  %v443_v60 = vpop.f32.mrb[15].mxu0  ;;  %v2734_v61 = vadd.f32 %v537_v54, %v2670_v9  ;;  %v539_v62 = vpop.f32.mrb[15].mxu1 }
 0x135   : > { %v444_v63 = vadd.f32 %v443_v60, %v2675_v0  ;;  %1004 = vmatprep.mubr.f32.mxu0 %v788_v51  ;;  %v2738_v2 = vadd.f32 %v539_v62, %v2675_v0 }
 0x136   : > { %1005 = vmatmul.mubr.f32.gmra.mrb[44].mxu0 %v787_v56  ;;  %v789_v7 = vmax.f32 %v442_v59, 0.0 }
 0x137   : > { %v790_v3 = vmax.f32 %v444_v63, 0.0  ;;  %v447_v5 = vpop.f32.mrb[16].mxu0  ;;  %v543_v6 = vpop.f32.mrb[16].mxu1 }
 0x138   : > { %v448_v10 = vadd.f32 %v447_v5, %v2670_v9  ;;  %v449_v11 = vpop.f32.mrb[17].mxu0  ;;  %v2742_v12 = vadd.f32 %v543_v6, %v2670_v9  ;;  %v545_v14 = vpop.f32.mrb[17].mxu1 }
 0x139   : > { %v450_v18 = vadd.f32 %v449_v11, %v2675_v0  ;;  %1010 = vmatprep.mubr.f32.mxu0 %v790_v3  ;;  %v2746_v15 = vadd.f32 %v545_v14, %v2675_v0 }
 0x13a   : > { %1011 = vmatmul.mubr.f32.gmra.mrb[46].mxu0 %v789_v7  ;;  %v791_v26 = vmax.f32 %v448_v10, 0.0 }
 0x13b   : > { %v792_v20 = vmax.f32 %v450_v18, 0.0  ;;  %v453_v23 = vpop.f32.mrb[18].mxu0  ;;  %v549_v24 = vpop.f32.mrb[18].mxu1 }
 0x13c   : > { %v454_v27 = vadd.f32 %v453_v23, %v2670_v9  ;;  %v455_v17 = vpop.f32.mrb[19].mxu0  ;;  %v2750_v29 = vadd.f32 %v549_v24, %v2670_v9  ;;  %v551_v35 = vpop.f32.mrb[19].mxu1 }
 0x13d   : > { %v456_v38 = vadd.f32 %v455_v17, %v2675_v0  ;;  %1016 = vmatprep.mubr.f32.mxu0 %v792_v20  ;;  %v2754_v57 = vadd.f32 %v551_v35, %v2675_v0  ;;  %v498_v17 = vadd.f32 %v2681_v43, %v2675_v0  ;;  %v814_v43 = vmax.f32 %v2706_v19, 0.0 }
 0x13e   : > { %1017 = vmatmul.mubr.f32.gmra.mrb[48].mxu0 %v791_v26  ;;  %v793_v30 = vmax.f32 %v454_v27, 0.0  ;;  %v819_v19 = vmax.f32 %v2726_v47, 0.0 }
 0x13f   : > { %v794_v8 = vmax.f32 %v456_v38, 0.0  ;;  %v459_v21 = vpop.f32.mrb[20].mxu0 }
 0x140   : > { %v460_v34 = vadd.f32 %v459_v21, %v2670_v9  ;;  %v461_v37 = vpop.f32.mrb[21].mxu0  ;;  %v2757_v22 = vpop.f32.mrb[20].mxu1 }
 0x141   : > { %v462_v31 = vadd.f32 %v461_v37, %v2675_v0  ;;  %1022 = vmatprep.mubr.f32.mxu0 %v794_v8  ;;  %v807_v37 = vmax.f32 %v2679_v42, 0.0  ;;  %v816_v42 = vmax.f32 %v2714_v32, 0.0 }
 0x142   : > { %v795_v40 = vmax.f32 %v460_v34, 0.0  ;;  %1023 = vmatmul.mubr.f32.gmra.mrb[50].mxu0 %v793_v30  ;;  %v808_v34 = vmax.f32 %v498_v17, 0.0 }
 0x143   : > { %v796_v41 = vmax.f32 %v462_v31, 0.0  ;;  %v465_v44 = vpop.f32.mrb[22].mxu0  ;;  %v810_v31 = vmax.f32 %v2690_v55, 0.0  ;;  %v815_v55 = vmax.f32 %v2710_v28, 0.0  ;;  %v821_v28 = vmax.f32 %v2734_v61, 0.0 }
 0x144   : > { %v466_v45 = vadd.f32 %v465_v44, %v2670_v9  ;;  %v467_v48 = vpop.f32.mrb[23].mxu0  ;;  %v822_v44 = vmax.f32 %v2738_v2, 0.0 }
 0x145   : > { %v468_v49 = vadd.f32 %v467_v48, %v2675_v0  ;;  %1028 = vmatprep.mubr.f32.mxu0 %v796_v41  ;;  %v813_v41 = vmax.f32 %v2702_v13, 0.0  ;;  %v622_v13 = vpop.f32.mrb[21].mxu1  ;;  %v826_v48 = vmax.f32 %v2754_v57, 0.0 }
 0x146   : > { %v797_v51 = vmax.f32 %v466_v45, 0.0  ;;  %1029 = vmatmul.mubr.f32.gmra.mrb[52].mxu0 %v795_v40  ;;  %v809_v40 = vmax.f32 %v2686_v52, 0.0  ;;  %v818_v52 = vmax.f32 %v2722_v39, 0.0  ;;  %v2786_v32 = vpop.f32.mrb[22].mxu1  ;;  %v824_v45 = vmax.f32 %v2746_v15, 0.0 }
 0x147   : > { %v798_v53 = vmax.f32 %v468_v49, 0.0  ;;  %v471_v54 = vpop.f32.mrb[24].mxu0  ;;  %v628_v39 = vpop.f32.mrb[23].mxu1  ;;  %v825_v49 = vmax.f32 %v2750_v29, 0.0 }
 0x148   : > { %v472_v56 = vadd.f32 %v471_v54, %v2670_v9  ;;  %v473_v59 = vpop.f32.mrb[25].mxu0 }
 0x149   : > { %v474_v60 = vadd.f32 %v473_v59, %v2675_v0  ;;  %1034 = vmatprep.mubr.f32.mxu0 %v798_v53 }
 0x14a   : > { %v799_v62 = vmax.f32 %v472_v56, 0.0  ;;  %1035 = vmatmul.mubr.f32.gmra.mrb[54].mxu0 %v797_v51 }
 0x14b   : > { %v800_v63 = vmax.f32 %v474_v60, 0.0  ;;  %v477_v3 = vpop.f32.mrb[26].mxu0 }
 0x14c   : > { %v478_v5 = vadd.f32 %v477_v3, %v2670_v9  ;;  %v479_v6 = vpop.f32.mrb[27].mxu0 }
 0x14d   : > { %v480_v7 = vadd.f32 %v479_v6, %v2675_v0  ;;  %1040 = vmatprep.mubr.f32.mxu0 %v800_v63 }
 0x14e   : > { %v801_v10 = vmax.f32 %v478_v5, 0.0  ;;  %1041 = vmatmul.mubr.f32.gmra.mrb[56].mxu0 %v799_v62 }
 0x14f   : > { %v802_v11 = vmax.f32 %v480_v7, 0.0  ;;  %v483_v14 = vpop.f32.mrb[28].mxu0 }
 0x150   : > { %v484_v18 = vadd.f32 %v483_v14, %v2670_v9  ;;  %v485_v20 = vpop.f32.mrb[29].mxu0 }
 0x151   : > { %v486_v23 = vadd.f32 %v485_v20, %v2675_v0  ;;  %1046 = vmatprep.mubr.f32.mxu0 %v802_v11 }
 0x152   : > { %v803_v24 = vmax.f32 %v484_v18, 0.0  ;;  %1047 = vmatmul.mubr.f32.gmra.mrb[58].mxu0 %v801_v10 }
 0x153   : > { %v804_v26 = vmax.f32 %v486_v23, 0.0  ;;  %v489_v27 = vpop.f32.mrb[30].mxu0 }
 0x154   : > { %v490_v35 = vadd.f32 %v489_v27, %v2670_v9  ;;  %v491_v38 = vpop.f32.mrb[31].mxu0  ;;  %v812_v9 = vmax.f32 %v2698_v4, 0.0  ;;  %v817_v4 = vmax.f32 %v2718_v33, 0.0  ;;  %v2790_v33 = vpop.f32.mrb[24].mxu1 }
 0x155   : > { %v492_v8 = vadd.f32 %v491_v38, %v2675_v0  ;;  %1052 = vmatprep.mubr.f32.mxu0 %v804_v26  ;;  %v811_v0 = vmax.f32 %v2694_v1, 0.0  ;;  %v820_v1 = vmax.f32 %v2730_v50, 0.0  ;;  %v823_v50 = vmax.f32 %v2742_v12, 0.0  ;;  %v2793_v47 = vpop.f32.mrb[25].mxu1 }
 0x156   : > { %v805_v21 = vmax.f32 %v490_v35, 0.0  ;;  %1053 = vmatmul.mubr.f32.gmra.mrb[60].mxu0 %v803_v24  ;;  %v2796_v2 = vpop.f32.mrb[26].mxu1  ;;  %v248_v35 = vsub.s32 3, %v2658_v25  ;;  %v2857_v38 = vld [vmem:[%s3620_s2 + $0x1] ss:$8 sm:$0x3] }
 0x157   : > { %v806_v30 = vmax.f32 %v492_v8, 0.0  ;;  %v2799_v61 = vpop.f32.mrb[27].mxu1 }
 0x158   : > { %v2801_v15 = vpop.f32.mrb[28].mxu1 }
 0x159   : > { %1058 = vmatprep.mubr.f32.mxu0 %v806_v30  ;;  %v2803_v51 = vpop.f32.mrb[29].mxu1  ;;  %v2866_v30 = vrot.slane %v2857_v38, %v236_v36 }
 0x15a   : > { %1059 = vmatmul.mubr.f32.gmra.mrb[62].mxu0 %v805_v21  ;;  %v2805_v12 = vpop.f32.mrb[30].mxu1 }
 0x15b   : > { %1064 = vmatprep.mubr.f32.mxu0 %v808_v34  ;;  %v2807_v53 = vpop.f32.mrb[31].mxu1  ;;  %v2869_v34 = vrot.slane %v2664_v46, %v248_v35 }
 0x15c   : > { %v2809_v54 = vpop.f32.mrb[32].mxu1 }
 0x15d   : > { %v2811_v57 = vpop.f32.mrb[33].mxu1 }
 0x15e   : > { %1065 = vmatmul.mubr.f32.gmra.mrb[64].mxu0 %v807_v37  ;;  %v2813_v56 = vpop.f32.mrb[34].mxu1 }
 0x15f   : > { %1070 = vmatprep.mubr.f32.mxu0 %v810_v31  ;;  %v2815_v29 = vpop.f32.mrb[35].mxu1 }
 0x160   : > { %v2817_v59 = vpop.f32.mrb[36].mxu1 }
 0x161   : > { %v2819_v60 = vpop.f32.mrb[37].mxu1 }
 0x162   : > { %1071 = vmatmul.mubr.f32.gmra.mrb[66].mxu0 %v809_v40 }
 0x163   : > { %1076 = vmatprep.mubr.f32.mxu0 %v812_v9 }
 0x164   : > { %v2821_v62 = vpop.f32.mrb[38].mxu1 }
 0x165   : > { %v2823_v63 = vpop.f32.mrb[39].mxu1 }
 0x166   : > { %1077 = vmatmul.mubr.f32.gmra.mrb[68].mxu0 %v811_v0  ;;  %v623_v0 = vadd.f32 %v622_v13, %v2869_v34 }
 0x167   : > { %1082 = vmatprep.mubr.f32.mxu0 %v814_v43 }
 0x168   : > { %v2825_v3 = vpop.f32.mrb[40].mxu1 }
 0x169   : > { %v2827_v5 = vpop.f32.mrb[41].mxu1 }
 0x16a   : > { %1083 = vmatmul.mubr.f32.gmra.mrb[70].mxu0 %v813_v41 }
 0x16b   : > { %1088 = vmatprep.mubr.f32.mxu0 %v816_v42 }
 0x16c   : > { %v2829_v6 = vpop.f32.mrb[42].mxu1 }
 0x16d   : > { %v2831_v7 = vpop.f32.mrb[43].mxu1 }
 0x16e   : > { %1089 = vmatmul.mubr.f32.gmra.mrb[72].mxu0 %v815_v55 }
 0x16f   : > { %1094 = vmatprep.mubr.f32.mxu0 %v818_v52 }
 0x170   : > { %v2833_v10 = vpop.f32.mrb[44].mxu1 }
 0x171   : > { %3634 = vst [vmem:[#allocation8_spill] sm:$0xff] %v2833_v10  ;;  %v2835_v11 = vpop.f32.mrb[45].mxu1 }
 0x172   : > { %1095 = vmatmul.mubr.f32.gmra.mrb[74].mxu0 %v817_v4  ;;  %v629_v4 = vadd.f32 %v628_v39, %v2869_v34  ;;  %v635_v39 = vadd.f32 %v2793_v47, %v2869_v34 }
 0x173   : > { %1100 = vmatprep.mubr.f32.mxu0 %v820_v1 }
 0x174   : > { %v2837_v14 = vpop.f32.mrb[46].mxu1 }
 0x175   : > { %3635 = vst [vmem:[#allocation9_spill] sm:$0xff] %v2837_v14  ;;  %v2839_v18 = vpop.f32.mrb[47].mxu1 }
 0x176   : > { %1101 = vmatmul.mubr.f32.gmra.mrb[76].mxu0 %v819_v19 }
 0x177   : > { %1106 = vmatprep.mubr.f32.mxu0 %v822_v44 }
 0x178   : > { %v2841_v20 = vpop.f32.mrb[48].mxu1 }
 0x179   : > { %3636 = vst [vmem:[#allocation10_spill] sm:$0xff] %v2841_v20  ;;  %v2843_v23 = vpop.f32.mrb[49].mxu1 }
 0x17a   : > { %1107 = vmatmul.mubr.f32.gmra.mrb[78].mxu0 %v821_v28 }
 0x17b   : > { %1112 = vmatprep.mubr.f32.mxu0 %v824_v45 }
 0x17c   : > { %v2845_v24 = vpop.f32.mrb[50].mxu1 }
 0x17d   : > { %3637 = vst [vmem:[#allocation11_spill] sm:$0xff] %v2845_v24  ;;  %v2847_v26 = vpop.f32.mrb[51].mxu1 }
 0x17e   : > { %1113 = vmatmul.mubr.f32.gmra.mrb[80].mxu0 %v823_v50 }
 0x17f   : > { %1118 = vmatprep.mubr.f32.mxu0 %v826_v48 }
 0x180   : > { %v2849_v27 = vpop.f32.mrb[52].mxu1 }
 0x181   : > { %3638 = vst [vmem:[#allocation12_spill] sm:$0xff] %v2849_v27  ;;  %v2851_v17 = vpop.f32.mrb[53].mxu1 }
 0x182   : > { %1119 = vmatmul.mubr.f32.gmra.mrb[82].mxu0 %v825_v49 }
 0x184   : > { %v2859_v8 = vpop.f32.mrb[54].mxu1 }
 0x185   : > { %3639 = vst [vmem:[#allocation13_spill] sm:$0xff] %v2859_v8  ;;  %v2861_v21 = vpop.f32.mrb[55].mxu1 }
 0x188   : > { %v2871_v37 = vpop.f32.mrb[56].mxu1 }
 0x189   : > { %3640 = vst [vmem:[#allocation14_spill] sm:$0xff] %v2871_v37  ;;  %v2873_v40 = vpop.f32.mrb[57].mxu1 }
 0x18c   : > { %v2879_v41 = vpop.f32.mrb[58].mxu1 }
 0x18d   : > { %3641 = vst [vmem:[#allocation15_spill] sm:$0xff] %v2879_v41  ;;  %v2881_v36 = vpop.f32.mrb[59].mxu1 }
 0x190   : > { %v2889_v44 = vpop.f32.mrb[60].mxu1 }
 0x191   : > { %3642 = vst [vmem:[#allocation16_spill] sm:$0xff] %v2889_v44  ;;  %v2893_v45 = vpop.f32.mrb[61].mxu1 }
 0x194   : > { %v2902_v35 = vpop.f32.mrb[62].mxu1 }
 0x195   : > { %3643 = vst [vmem:[#allocation17_spill] sm:$0xff] %v2902_v35 }
 0x1f1   : > { %v970_v31 = vpop.f32.mrb[32].mxu0 }
 0x1f2   : > { %v971_v9 = vadd.f32 %v970_v31, %v2866_v30  ;;  %v2877_v43 = vpop.f32.mrb[33].mxu0 }
 0x1f4   : > { %v1125_v42 = vand.u32 2147483647, %v971_v9 }
 0x1f5   : > { %v976_v55 = vpop.f32.mrb[34].mxu0 }
 0x1f6   : > { %v977_v52 = vadd.f32 %v976_v55, %v2866_v30  ;;  %v2885_v1 = vpop.f32.mrb[35].mxu0  ;;  %v2887_v19 = vmul.f32 %v1125_v42, %v623_v0  ;;  %v2906_v0 = vpop.f32.mrb[63].mxu1  ;;  %v641_v55 = vadd.f32 %v2799_v61, %v2869_v34  ;;  %v647_v61 = vadd.f32 %v2803_v51, %v2869_v34 }
 0x1f7   : > { %v2915_v47 = vpop.f32.mrb[64].mxu1 }
 0x1f8   : > { %v1126_v28 = vand.u32 2147483647, %v977_v52  ;;  %1177 = vrot.lane.b32.xlu0 %v2887_v19, %s2324_s4  ;;  %3644 = vst [vmem:[#allocation18_spill] sm:$0xff] %v2915_v47 }
 0x1f9   : > { %v982_v13 = vpop.f32.mrb[36].mxu0 }
 0x1fa   : > { %v2895_v50 = vmul.f32 %v1126_v28, %v629_v4  ;;  %v983_v48 = vadd.f32 %v982_v13, %v2866_v30  ;;  %v2900_v49 = vpop.f32.mrb[37].mxu0 }
 0x1fc   : > { %v1127_v31 = vand.u32 2147483647, %v983_v48  ;;  %1179 = vrot.lane.b32.xlu0 %v2895_v50, %s2324_s4  ;;  %v2919_v48 = vpop.f32.mrb[65].mxu1 }
 0x1fd   : > { %v988_v9 = vpop.f32.mrb[38].mxu0 }
 0x1fe   : > { %v989_v42 = vadd.f32 %v988_v9, %v2866_v30  ;;  %v2911_v52 = vpop.f32.mrb[39].mxu0  ;;  %v2913_v4 = vmul.f32 %v1127_v31, %v635_v39  ;;  %v2928_v39 = vpop.f32.mrb[66].mxu1 }
 0x1ff   : > { %3645 = vst [vmem:[#allocation19_spill] sm:$0xff] %v2928_v39  ;;  %v2932_v47 = vpop.f32.mrb[67].mxu1 }
 0x200   : > { %v1128_v28 = vand.u32 2147483647, %v989_v42  ;;  %1181 = vrot.lane.b32.xlu1 %v2913_v4, %s2324_s4  ;;  %v2941_v51 = vpop.f32.mrb[68].mxu1 }
 0x201   : > { %v994_v13 = vpop.f32.mrb[40].mxu0  ;;  %3646 = vst [vmem:[#allocation20_spill] sm:$0xff] %v2941_v51  ;;  %v2945_v39 = vpop.f32.mrb[69].mxu1 }
 0x202   : > { %v2921_v16 = vmul.f32 %v1128_v28, %v641_v55  ;;  %v995_v9 = vadd.f32 %v994_v13, %v2866_v30  ;;  %v2926_v58 = vpop.f32.mrb[41].mxu0  ;;  %v653_v28 = vadd.f32 %v2807_v53, %v2869_v34  ;;  %v2954_v53 = vpop.f32.mrb[70].mxu1 }
 0x203   : > { %3647 = vst [vmem:[#allocation21_spill] sm:$0xff] %v2954_v53  ;;  %v2958_v51 = vpop.f32.mrb[71].mxu1 }
 0x204   : > { %v1129_v31 = vand.u32 2147483647, %v995_v9  ;;  %1183 = vrot.lane.b32.xlu1 %v2921_v16, %s2324_s4 }
 0x205   : > { %v1000_v42 = vpop.f32.mrb[42].mxu0 }
 0x206   : > { %v2934_v35 = vmul.f32 %v1129_v31, %v647_v61  ;;  %v1001_v55 = vadd.f32 %v1000_v42, %v2866_v30  ;;  %v2939_v13 = vpop.f32.mrb[43].mxu0  ;;  %v659_v31 = vadd.f32 %v2811_v57, %v2869_v34 }
 0x208   : > { %v1130_v44 = vand.u32 2147483647, %v1001_v55  ;;  %1185 = vrot.lane.b32.xlu0 %v2934_v35, %s2324_s4 }
 0x209   : > { %v1006_v9 = vpop.f32.mrb[44].mxu0 }
 0x20a   : > { %v2947_v41 = vmul.f32 %v1130_v44, %v653_v28  ;;  %v1007_v61 = vadd.f32 %v1006_v9, %v2866_v30  ;;  %v2952_v42 = vpop.f32.mrb[45].mxu0  ;;  %v665_v28 = vadd.f32 %v2815_v29, %v2869_v34 }
 0x20c   : > { %v1131_v37 = vand.u32 2147483647, %v1007_v61  ;;  %1187 = vrot.lane.b32.xlu1 %v2947_v41, %s2324_s4 }
 0x20d   : > { %v1012_v55 = vpop.f32.mrb[46].mxu0 }
 0x20e   : > { %v2960_v8 = vmul.f32 %v1131_v37, %v659_v31  ;;  %v1013_v44 = vadd.f32 %v1012_v55, %v2866_v30  ;;  %v2965_v9 = vpop.f32.mrb[47].mxu0  ;;  %v671_v37 = vadd.f32 %v2819_v60, %v2869_v34 }
 0x210   : > { %v1132_v57 = vand.u32 2147483647, %v1013_v44  ;;  %1189 = vrot.lane.b32.xlu0 %v2960_v8, %s2324_s4 }
 0x211   : > { %v1018_v61 = vpop.f32.mrb[48].mxu0 }
 0x212   : > { %v2969_v53 = vmul.f32 %v1132_v57, %v665_v28  ;;  %v1019_v27 = vadd.f32 %v1018_v61, %v2866_v30  ;;  %v2974_v31 = vpop.f32.mrb[49].mxu0  ;;  %v677_v28 = vadd.f32 %v2823_v63, %v2869_v34 }
 0x213   : > { %3648 = vst [vmem:[#allocation22_spill] sm:$0xff] %v2974_v31 }
 0x214   : > { %v1133_v55 = vand.u32 2147483647, %v1019_v27  ;;  %1191 = vrot.lane.b32.xlu1 %v2969_v53, %s2324_s4 }
 0x215   : > { %v1024_v29 = vpop.f32.mrb[50].mxu0 }
 0x216   : > { %v2978_v24 = vmul.f32 %v1133_v55, %v671_v37  ;;  %v1025_v44 = vadd.f32 %v1024_v29, %v2866_v30  ;;  %v2983_v57 = vpop.f32.mrb[51].mxu0  ;;  %v683_v37 = vadd.f32 %v2827_v5, %v2869_v34 }
 0x217   : > { %3649 = vst [vmem:[#allocation23_spill] sm:$0xff] %v2983_v57 }
 0x218   : > { %v1134_v61 = vand.u32 2147483647, %v1025_v44  ;;  %1193 = vrot.lane.b32.xlu0 %v2978_v24, %s2324_s4 }
 0x219   : > { %v1030_v60 = vpop.f32.mrb[52].mxu0 }
 0x21a   : > { %v2987_v20 = vmul.f32 %v1134_v61, %v677_v28  ;;  %v1031_v27 = vadd.f32 %v1030_v60, %v2866_v30  ;;  %v2992_v55 = vpop.f32.mrb[53].mxu0  ;;  %v689_v28 = vadd.f32 %v2831_v7, %v2869_v34 }
 0x21b   : > { %3650 = vst [vmem:[#allocation24_spill] sm:$0xff] %v2992_v55 }
 0x21c   : > { %v1135_v29 = vand.u32 2147483647, %v1031_v27  ;;  %1195 = vrot.lane.b32.xlu1 %v2987_v20, %s2324_s4 }
 0x21d   : > { %v1036_v63 = vpop.f32.mrb[54].mxu0 }
 0x21e   : > { %v2996_v57 = vmul.f32 %v1135_v29, %v683_v37  ;;  %v1037_v44 = vadd.f32 %v1036_v63, %v2866_v30  ;;  %v3001_v61 = vpop.f32.mrb[55].mxu0  ;;  %v695_v37 = vadd.f32 %v2835_v11, %v2869_v34 }
 0x21f   : > { %3651 = vst [vmem:[#allocation25_spill] sm:$0xff] %v3001_v61 }
 0x220   : > { %v1136_v60 = vand.u32 2147483647, %v1037_v44  ;;  %1197 = vrot.lane.b32.xlu0 %v2996_v57, %s2324_s4 }
 0x221   : > { %v1042_v5 = vpop.f32.mrb[56].mxu0 }
 0x222   : > { %v3005_v55 = vmul.f32 %v1136_v60, %v689_v28  ;;  %v1043_v27 = vadd.f32 %v1042_v5, %v2866_v30  ;;  %v3010_v29 = vpop.f32.mrb[57].mxu0  ;;  %v701_v28 = vadd.f32 %v2839_v18, %v2869_v34 }
 0x223   : > { %3652 = vst [vmem:[#allocation26_spill] sm:$0xff] %v3010_v29 }
 0x224   : > { %v1137_v63 = vand.u32 2147483647, %v1043_v27  ;;  %1199 = vrot.lane.b32.xlu1 %v3005_v55, %s2324_s4 }
 0x225   : > { %v1048_v7 = vpop.f32.mrb[58].mxu0 }
 0x226   : > { %v3014_v61 = vmul.f32 %v1137_v63, %v695_v37  ;;  %v1049_v44 = vadd.f32 %v1048_v7, %v2866_v30  ;;  %v3019_v60 = vpop.f32.mrb[59].mxu0  ;;  %v707_v37 = vadd.f32 %v2843_v23, %v2869_v34 }
 0x227   : > { %3653 = vst [vmem:[#allocation27_spill] sm:$0xff] %v3019_v60 }
 0x228   : > { %v1138_v5 = vand.u32 2147483647, %v1049_v44  ;;  %1201 = vrot.lane.b32.xlu0 %v3014_v61, %s2324_s4 }
 0x229   : > { %v1054_v11 = vpop.f32.mrb[60].mxu0 }
 0x22a   : > { %v3023_v29 = vmul.f32 %v1138_v5, %v701_v28  ;;  %v1055_v27 = vadd.f32 %v1054_v11, %v2866_v30  ;;  %v3028_v63 = vpop.f32.mrb[61].mxu0  ;;  %v713_v28 = vadd.f32 %v2847_v26, %v2869_v34 }
 0x22b   : > { %3654 = vst [vmem:[#allocation28_spill] sm:$0xff] %v3028_v63 }
 0x22c   : > { %v1139_v7 = vand.u32 2147483647, %v1055_v27  ;;  %1203 = vrot.lane.b32.xlu1 %v3023_v29, %s2324_s4 }
 0x22d   : > { %v1060_v18 = vpop.f32.mrb[62].mxu0 }
 0x22e   : > { %v3032_v60 = vmul.f32 %v1139_v7, %v707_v37  ;;  %v1061_v44 = vadd.f32 %v1060_v18, %v2866_v30  ;;  %v3037_v5 = vpop.f32.mrb[63].mxu0  ;;  %v719_v37 = vadd.f32 %v2851_v17, %v2869_v34 }
 0x22f   : > { %3655 = vst [vmem:[#allocation29_spill] sm:$0xff] %v3037_v5 }
 0x230   : > { %v1140_v11 = vand.u32 2147483647, %v1061_v44  ;;  %1205 = vrot.lane.b32.xlu0 %v3032_v60, %s2324_s4 }
 0x231   : > { %v1066_v23 = vpop.f32.mrb[64].mxu0 }
 0x232   : > { %v3041_v63 = vmul.f32 %v1140_v11, %v713_v28  ;;  %v1067_v27 = vadd.f32 %v1066_v23, %v2866_v30  ;;  %v3044_v14 = vpop.f32.mrb[65].mxu0  ;;  %v725_v28 = vadd.f32 %v2861_v21, %v2869_v34  ;;  %v737_v21 = vadd.f32 %v2881_v36, %v2869_v34 }
 0x233   : > { %3656 = vst [vmem:[#allocation30_spill] sm:$0xff] %v3044_v14  ;;  %v749_v36 = vadd.f32 %v2906_v0, %v2869_v34  ;;  %v761_v0 = vadd.f32 %v2932_v47, %v2869_v34  ;;  %v773_v47 = vadd.f32 %v2958_v51, %v2869_v34 }
 0x234   : > { %1207 = vrot.lane.b32.xlu1 %v3041_v63, %s2324_s4  ;;  %v1141_v26 = vand.u32 2147483647, %v1067_v27  ;;  %v731_v27 = vadd.f32 %v2873_v40, %v2869_v34  ;;  %v743_v40 = vadd.f32 %v2893_v45, %v2869_v34  ;;  %v755_v45 = vadd.f32 %v2919_v48, %v2869_v34 }
 0x235   : > { %v1072_v7 = vpop.f32.mrb[66].mxu0  ;;  %v767_v48 = vadd.f32 %v2945_v39, %v2869_v34 }
 0x236   : > { %v3050_v18 = vmul.f32 %v1141_v26, %v719_v37  ;;  %v1073_v44 = vadd.f32 %v1072_v7, %v2866_v30  ;;  %v3053_v5 = vpop.f32.mrb[67].mxu0 }
 0x237   : > { %3657 = vst [vmem:[#allocation31_spill] sm:$0xff] %v3053_v5 }
 0x238   : > { %v1142_v11 = vand.u32 2147483647, %v1073_v44 }
 0x239   : > { %v1078_v23 = vpop.f32.mrb[68].mxu0 }
 0x23a   : > { %v3057_v14 = vmul.f32 %v1142_v11, %v725_v28  ;;  %v1079_v17 = vadd.f32 %v1078_v23, %v2866_v30  ;;  %v3060_v31 = vpop.f32.mrb[69].mxu0 }
 0x23b   : > { %3658 = vst [vmem:[#allocation32_spill] sm:$0xff] %v3060_v31 }
 0x23c   : > { %v1143_v37 = vand.u32 2147483647, %v1079_v17 }
 0x23d   : > { %v1084_v26 = vpop.f32.mrb[70].mxu0 }
 0x23e   : > { %v3064_v10 = vmul.f32 %v1143_v37, %v731_v27  ;;  %v1085_v7 = vadd.f32 %v1084_v26, %v2866_v30  ;;  %v3067_v5 = vpop.f32.mrb[71].mxu0 }
 0x23f   : > { %3659 = vst [vmem:[#allocation33_spill] sm:$0xff] %v3067_v5 }
 0x240   : > { %v1144_v44 = vand.u32 2147483647, %v1085_v7 }
 0x241   : > { %v1090_v28 = vpop.f32.mrb[72].mxu0 }
 0x242   : > { %v3071_v11 = vmul.f32 %v1144_v44, %v737_v21  ;;  %v1091_v23 = vadd.f32 %v1090_v28, %v2866_v30  ;;  %v3074_v31 = vpop.f32.mrb[73].mxu0 }
 0x243   : > { %3660 = vst [vmem:[#allocation34_spill] sm:$0xff] %v3074_v31 }
 0x244   : > { %v1145_v17 = vand.u32 2147483647, %v1091_v23 }
 0x245   : > { %v1096_v27 = vpop.f32.mrb[74].mxu0 }
 0x246   : > { %v3078_v37 = vmul.f32 %v1145_v17, %v743_v40  ;;  %v1097_v26 = vadd.f32 %v1096_v27, %v2866_v30  ;;  %v3081_v5 = vpop.f32.mrb[75].mxu0 }
 0x247   : > { %3661 = vst [vmem:[#allocation35_spill] sm:$0xff] %v3081_v5 }
 0x248   : > { %v1146_v7 = vand.u32 2147483647, %v1097_v26 }
 0x249   : > { %v1102_v21 = vpop.f32.mrb[76].mxu0 }
 0x24a   : > { %v3085_v44 = vmul.f32 %v1146_v7, %v749_v36  ;;  %v1103_v28 = vadd.f32 %v1102_v21, %v2866_v30  ;;  %v3088_v31 = vpop.f32.mrb[77].mxu0 }
 0x24b   : > { %3662 = vst [vmem:[#allocation36_spill] sm:$0xff] %v3088_v31 }
 0x24c   : > { %v1147_v23 = vand.u32 2147483647, %v1103_v28 }
 0x24d   : > { %v1108_v40 = vpop.f32.mrb[78].mxu0 }
 0x24e   : > { %v3092_v17 = vmul.f32 %v1147_v23, %v755_v45  ;;  %v1109_v27 = vadd.f32 %v1108_v40, %v2866_v30  ;;  %v3095_v5 = vpop.f32.mrb[79].mxu0 }
 0x24f   : > { %3663 = vst [vmem:[#allocation37_spill] sm:$0xff] %v3095_v5 }
 0x250   : > { %v1148_v26 = vand.u32 2147483647, %v1109_v27 }
 0x251   : > { %v1114_v36 = vpop.f32.mrb[80].mxu0 }
 0x252   : > { %v3099_v7 = vmul.f32 %v1148_v26, %v761_v0  ;;  %v1115_v21 = vadd.f32 %v1114_v36, %v2866_v30  ;;  %v3102_v31 = vpop.f32.mrb[81].mxu0 }
 0x254   : > { %v1149_v28 = vand.u32 2147483647, %v1115_v21 }
 0x255   : > { %v1120_v45 = vpop.f32.mrb[82].mxu0 }
 0x256   : > { %v3106_v23 = vmul.f32 %v1149_v28, %v767_v48  ;;  %v1121_v40 = vadd.f32 %v1120_v45, %v2866_v30  ;;  %v3109_v5 = vpop.f32.mrb[83].mxu0  ;;  %v2326_v28 = vmov 0.0|0.0  }
 0x257   : > { %2057 = vmatprep.subr.bf16.mxu1 %v2326_v28 }
 0x258   : > { %v1150_v27 = vand.u32 2147483647, %v1121_v40 }
 0x25a   : > { %v3113_v0 = vmul.f32 %v1150_v27, %v773_v47 }
 0x26a   : > { %v1178_v26 = vpop.permute.xlu0 %1177 }
 0x26b   : > { %v3116_v36 = vadd.f32 %v1178_v26, %v2887_v19 }
 0x26d   : > { %1255 = vrot.lane.b32.xlu0 %v3116_v36, %s2325_s5 }
 0x26e   : > { %v1180_v39 = vpop.permute.xlu0 %1179 }
 0x26f   : > { %v3121_v21 = vadd.f32 %v1180_v39, %v2895_v50 }
 0x271   : > { %1209 = vrot.lane.b32.xlu0 %v3050_v18, %s2324_s4  ;;  %1257 = vrot.lane.b32.xlu1 %v3121_v21, %s2325_s5 }
 0x272   : > { %v1182_v30 = vpop.permute.xlu1 %1181 }
 0x273   : > { %v3128_v34 = vadd.f32 %v1182_v30, %v2913_v4 }
 0x275   : > { %1259 = vrot.lane.b32.xlu0 %v3128_v34, %s2325_s5  ;;  %1211 = vrot.lane.b32.xlu1 %v3057_v14, %s2324_s4 }
 0x276   : > { %v1184_v19 = vpop.permute.xlu1 %1183 }
 0x277   : > { %v3135_v50 = vadd.f32 %v1184_v19, %v2921_v16 }
 0x279   : > { %1213 = vrot.lane.b32.xlu0 %v3064_v10, %s2324_s4  ;;  %1261 = vrot.lane.b32.xlu1 %v3135_v50, %s2325_s5 }
 0x27a   : > { %v1186_v51 = vpop.permute.xlu0 %1185 }
 0x27b   : > { %v3142_v4 = vadd.f32 %v1186_v51, %v2934_v35 }
 0x27d   : > { %1215 = vrot.lane.b32.xlu1 %v3071_v11, %s2324_s4  ;;  %1263 = vrot.lane.b32.xlu0 %v3142_v4, %s2325_s5 }
 0x27e   : > { %v1188_v48 = vpop.permute.xlu1 %1187 }
 0x27f   : > { %v3149_v16 = vadd.f32 %v1188_v48, %v2947_v41 }
 0x281   : > { %1265 = vrot.lane.b32.xlu1 %v3149_v16, %s2325_s5  ;;  %1217 = vrot.lane.b32.xlu0 %v3078_v37, %s2324_s4 }
 0x282   : > { %v1190_v35 = vpop.permute.xlu0 %1189 }
 0x283   : > { %v3157_v45 = vadd.f32 %v1190_v35, %v2960_v8 }
 0x285   : > { %1219 = vrot.lane.b32.xlu1 %v3085_v44, %s2324_s4  ;;  %1267 = vrot.lane.b32.xlu0 %v3157_v45, %s2325_s5 }
 0x286   : > { %v1192_v41 = vpop.permute.xlu1 %1191 }
 0x287   : > { %v3164_v40 = vadd.f32 %v1192_v41, %v2969_v53 }
 0x289   : > { %1269 = vrot.lane.b32.xlu1 %v3164_v40, %s2325_s5  ;;  %1221 = vrot.lane.b32.xlu0 %v3092_v17, %s2324_s4 }
 0x28a   : > { %v1194_v47 = vpop.permute.xlu0 %1193 }
 0x28b   : > { %v3171_v8 = vadd.f32 %v1194_v47, %v2978_v24 }
 0x28d   : > { %1223 = vrot.lane.b32.xlu1 %v3099_v7, %s2324_s4  ;;  %1271 = vrot.lane.b32.xlu0 %v3171_v8, %s2325_s5 }
 0x28e   : > { %v1196_v27 = vpop.permute.xlu1 %1195 }
 0x28f   : > { %v3178_v53 = vadd.f32 %v1196_v27, %v2987_v20 }
 0x291   : > { %1273 = vrot.lane.b32.xlu1 %v3178_v53, %s2325_s5  ;;  %1225 = vrot.lane.b32.xlu0 %v3106_v23, %s2324_s4 }
 0x292   : > { %v1198_v26 = vpop.permute.xlu0 %1197 }
 0x293   : > { %v3185_v24 = vadd.f32 %v1198_v26, %v2996_v57 }
 0x295   : > { %1227 = vrot.lane.b32.xlu1 %v3113_v0, %s2324_s4  ;;  %1275 = vrot.lane.b32.xlu0 %v3185_v24, %s2325_s5 }
 0x296   : > { %v1200_v39 = vpop.permute.xlu1 %1199 }
 0x297   : > { %v3192_v20 = vadd.f32 %v1200_v39, %v3005_v55 }
 0x299   : > { %1277 = vrot.lane.b32.xlu1 %v3192_v20, %s2325_s5 }
 0x29a   : > { %v1202_v30 = vpop.permute.xlu0 %1201 }
 0x29b   : > { %v3197_v19 = vadd.f32 %v1202_v30, %v3014_v61 }
 0x29d   : > { %1279 = vrot.lane.b32.xlu0 %v3197_v19, %s2325_s5 }
 0x29e   : > { %v1204_v57 = vpop.permute.xlu1 %1203 }
 0x29f   : > { %v3202_v51 = vadd.f32 %v1204_v57, %v3023_v29  ;;  %v244_v29 = vsub.s32 2, %v2658_v25 }
 0x2a1   : > { %1281 = vrot.lane.b32.xlu1 %v3202_v51, %s2325_s5  ;;  %v3218_v41 = vrot.slane %v2664_v46, %v244_v29 }
 0x2a2   : > { %v1206_v48 = vpop.permute.xlu0 %1205 }
 0x2a3   : > { %v3207_v55 = vadd.f32 %v1206_v48, %v3032_v60  ;;  %v621_v60 = vadd.f32 %v2757_v22, %v3218_v41 }
 0x2a5   : > { %1283 = vrot.lane.b32.xlu0 %v3207_v55, %s2325_s5 }
 0x2a6   : > { %v1208_v35 = vpop.permute.xlu1 %1207 }
 0x2a7   : > { %v3212_v61 = vadd.f32 %v1208_v35, %v3041_v63  ;;  %v627_v63 = vadd.f32 %v2786_v32, %v3218_v41  ;;  %v633_v32 = vadd.f32 %v2790_v33, %v3218_v41 }
 0x2a9   : > { %1285 = vrot.lane.b32.xlu1 %v3212_v61, %s2325_s5 }
 0x2df   : > { %v1256_v47 = vpop.permute.xlu0 %1255 }
 0x2e0   : > { %v1307_v27 = vadd.f32 %v1256_v47, %v3116_v36 }
 0x2e2   : > { %v1333_v26 = vadd.f32 %v1307_v27, %v621_v60  ;;  %v3664_v27 = vsub.s32 1, %v2658_v25 }
 0x2e3   : > { %v1258_v39 = vpop.permute.xlu1 %1257  ;;  %v1210_v30 = vpop.permute.xlu0 %1209 }
 0x2e4   : > { %v1385_v57 = vmin.f32 %v1333_v26, 0.0  ;;  %v1308_v48 = vadd.f32 %v1258_v39, %v3121_v21  ;;  %v3227_v35 = vadd.f32 %v1210_v30, %v3050_v18  ;;  %v3245_v39 = vrot.slane %v2857_v38, %v3664_v27 }
 0x2e5   : > { %vm1359_vm1 = vcmp.gt.f32.partialorder %v1333_v26, 0.0 }
 0x2e6   : > { %v1411_v46 = vmul.f32 1.442695, %v1385_v57  ;;  %v3229_v29 = vadd.f32 %v1308_v48, %v627_v63  ;;  %1287 = vrot.lane.b32.xlu0 %v3227_v35, %s2325_s5  ;;  %v973_v38 = vadd.f32 %v2877_v43, %v3245_v39 }
 0x2e7   : > { %v1212_v22 = vpop.permute.xlu1 %1211  ;;  %v1260_v36 = vpop.permute.xlu0 %1259 }
 0x2e8   : > { %2172 = vpow2.f32 %v1411_v46  ;;  %v1386_v47 = vmin.f32 %v3229_v29, 0.0  ;;  %v3235_v60 = vadd.f32 %v1212_v22, %v3057_v14  ;;  %v1309_v18 = vadd.f32 %v1260_v36, %v3128_v34 }
 0x2e9   : > { %v639_v14 = vadd.f32 %v2796_v2, %v3218_v41  ;;  %v645_v2 = vadd.f32 %v2801_v15, %v3218_v41  ;;  %v1515_v43 = vand.u32 2147483647, %v973_v38  ;;  %v651_v15 = vadd.f32 %v2805_v12, %v3218_v41 }
 0x2ea   : > { %v1413_v21 = vmul.f32 1.442695, %v1386_v47  ;;  %1289 = vrot.lane.b32.xlu1 %v3235_v60, %s2325_s5  ;;  %v3247_v30 = vadd.f32 %v1309_v18, %v633_v32  ;;  %vm1360_vm3 = vcmp.gt.f32.partialorder %v3229_v29, 0.0 }
 0x2eb   : > { %v1262_v63 = vpop.permute.xlu1 %1261  ;;  %v1214_v57 = vpop.permute.xlu0 %1213 }
 0x2ec   : > { %2174 = vpow2.f32 %v1413_v21  ;;  %v1310_v33 = vadd.f32 %v1262_v63, %v3135_v50  ;;  %v3253_v34 = vadd.f32 %v1214_v57, %v3064_v10  ;;  %v1387_v48 = vmin.f32 %v3247_v30, 0.0 }
 0x2ed   : > { %v979_v63 = vadd.f32 %v2885_v1, %v3245_v39  ;;  %vm1361_vm6 = vcmp.gt.f32.partialorder %v3247_v30, 0.0 }
 0x2ee   : > { %v3256_v46 = vadd.f32 %v1310_v33, %v639_v14  ;;  %1291 = vrot.lane.b32.xlu0 %v3253_v34, %s2325_s5  ;;  %v1415_v22 = vmul.f32 1.442695, %v1387_v48 }
 0x2ef   : > { %v1216_v36 = vpop.permute.xlu1 %1215  ;;  %v1264_v47 = vpop.permute.xlu0 %1263  ;;  %v1516_v12 = vand.u32 2147483647, %v979_v63 }
 0x2f0   : > { %v1388_v50 = vmin.f32 %v3256_v46, 0.0  ;;  %v3266_v10 = vadd.f32 %v1216_v36, %v3071_v11  ;;  %v1311_v32 = vadd.f32 %v1264_v47, %v3142_v4  ;;  %2176 = vpow2.f32 %v1415_v22 }
 0x2f1   : > { %vm1362_vm7 = vcmp.gt.f32.partialorder %v3256_v46, 0.0 }
 0x2f2   : > { %v2173_v18 = vpop.eup %2172  ;;  %v1417_v21 = vmul.f32 1.442695, %v1388_v50  ;;  %v3269_v27 = vadd.f32 %v1311_v32, %v645_v2  ;;  %1293 = vrot.lane.b32.xlu1 %v3266_v10, %s2325_s5  ;;  %v985_v50 = vadd.f32 %v2900_v49, %v3245_v39  ;;  %v657_v32 = vadd.f32 %v2809_v54, %v3218_v41 }
 0x2f3   : > { %v1918_v57 = vadd.f32 -1.0, %v2173_v18  ;;  %v1266_v11 = vpop.permute.xlu1 %1265  ;;  %v1218_v14 = vpop.permute.xlu0 %1217 }
 0x2f4   : > { %2178 = vpow2.f32 %v1417_v21  ;;  %v1389_v4 = vmin.f32 %v3269_v27, 0.0  ;;  %v1312_v33 = vadd.f32 %v1266_v11, %v3149_v16  ;;  %v3280_v22 = vadd.f32 %v1218_v14, %v3078_v37 }
 0x2f5   : > { %v1489_v48 = vsel %vm1359_vm1, %v1333_v26, %v1918_v57  ;;  %vm1363_vm8 = vcmp.gt.f32.partialorder %v3269_v27, 0.0 }
 0x2f6   : > { %v2175_v36 = vpop.eup %2174  ;;  %v1541_v47 = vmul.f32 %v1515_v43, %v1489_v48  ;;  %v1419_v1 = vmul.f32 1.442695, %v1389_v4  ;;  %v3282_v2 = vadd.f32 %v1312_v33, %v651_v15  ;;  %1295 = vrot.lane.b32.xlu0 %v3280_v22, %s2325_s5  ;;  %v991_v15 = vadd.f32 %v2911_v52, %v3245_v39 }
 0x2f7   : > { %v1919_v18 = vadd.f32 -1.0, %v2175_v36  ;;  %v1220_v16 = vpop.permute.xlu1 %1219  ;;  %v1268_v26 = vpop.permute.xlu0 %1267  ;;  %v663_v4 = vadd.f32 %v2813_v56, %v3218_v41 }
 0x2f8   : > { %v1568_v37 = vsel %vm1567_vm2, %v1541_v47, %v973_v38  ;;  %2180 = vpow2.f32 %v1419_v1  ;;  %v1390_v21 = vmin.f32 %v3282_v2, 0.0  ;;  %v3295_v49 = vadd.f32 %v1220_v16, %v3085_v44 }
 0x2f9   : > { %v1490_v43 = vsel %vm1360_vm3, %v3229_v29, %v1919_v18  ;;  %v1313_v54 = vadd.f32 %v1268_v26, %v3157_v45  ;;  %v1517_v38 = vand.u32 2147483647, %v985_v50  ;;  %v997_v16 = vadd.f32 %v2926_v58, %v3245_v39 }
 0x2fa   : > { %v1542_v57 = vmul.f32 %v1516_v12, %v1490_v43  ;;  %v1421_v11 = vmul.f32 1.442695, %v1390_v21  ;;  %v2177_v14 = vpop.eup %2176  ;;  %1297 = vrot.lane.b32.xlu1 %v3295_v49, %s2325_s5  ;;  %vm1364_vm9 = vcmp.gt.f32.partialorder %v3282_v2, 0.0 }
 0x2fb   : > { %v3302_v33 = vadd.f32 %v1313_v54, %v657_v32  ;;  %v1270_v44 = vpop.permute.xlu1 %1269  ;;  %v1222_v29 = vpop.permute.xlu0 %1221  ;;  %v1920_v48 = vadd.f32 -1.0, %v2177_v14  ;;  %v669_v32 = vadd.f32 %v2817_v59, %v3218_v41  ;;  %v1003_v14 = vadd.f32 %v2939_v13, %v3245_v39 }
 0x2fc   : > { %v1569_v45 = vsel %vm1567_vm2, %v1542_v57, %v979_v63  ;;  %2182 = vpow2.f32 %v1421_v11  ;;  %v1314_v52 = vadd.f32 %v1270_v44, %v3164_v40  ;;  %v3317_v47 = vadd.f32 %v1222_v29, %v3092_v17 }
 0x2fd   : > { %v1391_v56 = vmin.f32 %v3302_v33, 0.0  ;;  %v2058_v1 = vpack.c.bf16 %v1569_v45, %v1568_v37  ;;  %v1518_v63 = vand.u32 2147483647, %v991_v15  ;;  %v1491_v40 = vsel %vm1361_vm6, %v3247_v30, %v1920_v48 }
 0x2fe   : > { %v2179_v12 = vpop.eup %2178  ;;  %v3322_v18 = vadd.f32 %v1314_v52, %v663_v4  ;;  %v1543_v26 = vmul.f32 %v1517_v38, %v1491_v40  ;;  %1299 = vrot.lane.b32.xlu0 %v3317_v47, %s2325_s5  ;;  %v1009_v40 = vadd.f32 %v2952_v42, %v3245_v39  ;;  %vm1365_vm10 = vcmp.gt.f32.partialorder %v3302_v33, 0.0 }
 0x2ff   : > { %v1921_v21 = vadd.f32 -1.0, %v2179_v12  ;;  %v1423_v43 = vmul.f32 1.442695, %v1391_v56  ;;  %v1224_v17 = vpop.permute.xlu1 %1223  ;;  %2060 = vmatpush1.bf16.xpose.msk.msra.mxu1 %vm3310_vm5, %v2058_v1  ;;  %v1272_v37 = vpop.permute.xlu0 %1271 }
 0x300   : > { %v1392_v59 = vmin.f32 %v3322_v18, 0.0  ;;  %v3333_v30 = vadd.f32 %v1224_v17, %v3099_v7  ;;  %v1315_v58 = vadd.f32 %v1272_v37, %v3171_v8  ;;  %2061 = vmatprep.subr.bf16.mxu1 %v2326_v28  ;;  %v1570_v54 = vsel %vm1567_vm2, %v1543_v26, %v985_v50 }
 0x301   : > { %v1492_v57 = vsel %vm1362_vm7, %v3256_v46, %v1921_v21  ;;  %2184 = vpow2.f32 %v1423_v43  ;;  %v1519_v7 = vand.u32 2147483647, %v997_v16  ;;  %v675_v8 = vadd.f32 %v2821_v62, %v3218_v41 }
 0x302   : > { %v2181_v11 = vpop.eup %2180  ;;  %v1544_v38 = vmul.f32 %v1518_v63, %v1492_v57  ;;  %v1425_v4 = vmul.f32 1.442695, %v1392_v59  ;;  %v3341_v44 = vadd.f32 %v1315_v58, %v669_v32  ;;  %1301 = vrot.lane.b32.xlu1 %v3333_v30, %s2325_s5  ;;  %v1520_v62 = vand.u32 2147483647, %v1003_v14 }
 0x303   : > { %v1922_v29 = vadd.f32 -1.0, %v2181_v11  ;;  %v1274_v50 = vpop.permute.xlu1 %1273  ;;  %v1226_v45 = vpop.permute.xlu0 %1225  ;;  %v681_v63 = vadd.f32 %v2825_v3, %v3218_v41  ;;  %vm1366_vm11 = vcmp.gt.f32.partialorder %v3322_v18, 0.0 }
 0x304   : > { %v1571_v46 = vsel %vm1567_vm2, %v1544_v38, %v991_v15  ;;  %2186 = vpow2.f32 %v1425_v4  ;;  %v1393_v13 = vmin.f32 %v3341_v44, 0.0  ;;  %v1316_v52 = vadd.f32 %v1274_v50, %v3178_v53 }
 0x305   : > { %v1493_v48 = vsel %vm1363_vm8, %v3269_v27, %v1922_v29  ;;  %v3353_v56 = vadd.f32 %v1226_v45, %v3106_v23  ;;  %v2062_v1 = vpack.c.bf16 %v1571_v46, %v1570_v54  ;;  %v3667_v29 = vld [vmem:[#allocation8_spill] sm:$0xff]  ;;  %vm1367_vm12 = vcmp.gt.f32.partialorder %v3341_v44, 0.0 }
 0x306   : > { %v2183_v12 = vpop.eup %2182  ;;  %v1545_v32 = vmul.f32 %v1519_v7, %v1493_v48  ;;  %v1427_v15 = vmul.f32 1.442695, %v1393_v13  ;;  %v3360_v27 = vadd.f32 %v1316_v52, %v675_v8 }
 0x307   : > { %v1923_v26 = vadd.f32 -1.0, %v2183_v12  ;;  %1303 = vrot.lane.b32.xlu0 %v3353_v56, %s2325_s5  ;;  %v1228_v23 = vpop.permute.xlu1 %1227  ;;  %2064 = vmatpush1.bf16.xpose.msk.msra.mxu1 %vm3310_vm5, %v2062_v1  ;;  %v1276_v53 = vpop.permute.xlu0 %1275 }
 0x308   : > { %v1572_v3 = vsel %vm1567_vm2, %v1545_v32, %v997_v16  ;;  %2188 = vpow2.f32 %v1427_v15  ;;  %v3368_v21 = vadd.f32 %v1228_v23, %v3113_v0  ;;  %v1317_v42 = vadd.f32 %v1276_v53, %v3185_v24  ;;  %2065 = vmatprep.subr.bf16.mxu1 %v2326_v28  ;;  %v3669_v23 = vld [vmem:[#allocation9_spill] sm:$0xff] }
 0x309   : > { %v1494_v43 = vsel %vm1364_vm9, %v3282_v2, %v1923_v26  ;;  %v1394_v17 = vmin.f32 %v3360_v27, 0.0  ;;  %v1521_v16 = vand.u32 2147483647, %v1009_v40  ;;  %v687_v0 = vadd.f32 %v2829_v6, %v3218_v41 }
 0x30a   : > { %v1546_v37 = vmul.f32 %v1520_v62, %v1494_v43  ;;  %v3374_v59 = vadd.f32 %v1317_v42, %v681_v63  ;;  %1305 = vrot.lane.b32.xlu1 %v3368_v21, %s2325_s5  ;;  %v1015_v24 = vadd.f32 %v2965_v9, %v3245_v39  ;;  %v693_v6 = vadd.f32 %v3667_v29, %v3218_v41  ;;  %v3668_v9 = vld [vmem:[#allocation22_spill] sm:$0xff] }
 0x30b   : > { %v2185_v58 = vpop.eup %2184  ;;  %v1429_v54 = vmul.f32 1.442695, %v1394_v17  ;;  %v1278_v57 = vpop.permute.xlu1 %1277  ;;  %v1021_v46 = vadd.f32 %v3668_v9, %v3245_v39  ;;  %v699_v53 = vadd.f32 %v3669_v23, %v3218_v41  ;;  %v3670_v17 = vld [vmem:[#allocation23_spill] sm:$0xff]  ;;  %vm1368_vm13 = vcmp.gt.f32.partialorder %v3360_v27, 0.0 }
 0x30c   : > { %v1573_v2 = vsel %vm1567_vm2, %v1546_v37, %v1003_v14  ;;  %v1924_v11 = vadd.f32 -1.0, %v2185_v58  ;;  %v1395_v38 = vmin.f32 %v3374_v59, 0.0  ;;  %v1318_v4 = vadd.f32 %v1278_v57, %v3192_v20 }
 0x30d   : > { %2190 = vpow2.f32 %v1429_v54  ;;  %v2066_v7 = vpack.c.bf16 %v1573_v2, %v1572_v3  ;;  %v1522_v20 = vand.u32 2147483647, %v1015_v24  ;;  %v1523_v26 = vand.u32 2147483647, %v1021_v46 }
 0x30e   : > { %v2187_v8 = vpop.eup %2186  ;;  %v1495_v50 = vsel %vm1365_vm10, %v3302_v33, %v1924_v11  ;;  %v1431_v45 = vmul.f32 1.442695, %v1395_v38  ;;  %v3391_v48 = vadd.f32 %v1318_v4, %v687_v0  ;;  %v1027_v37 = vadd.f32 %v3670_v17, %v3245_v39 }
 0x30f   : > { %v1547_v14 = vmul.f32 %v1521_v16, %v1495_v50  ;;  %v1925_v13 = vadd.f32 -1.0, %v2187_v8  ;;  %2068 = vmatpush1.bf16.xpose.msk.msra.mxu1 %vm3310_vm5, %v2066_v7  ;;  %v1280_v52 = vpop.permute.xlu0 %1279  ;;  %vm1369_vm14 = vcmp.gt.f32.partialorder %v3374_v59, 0.0 }
 0x310   : > { %2192 = vpow2.f32 %v1431_v45  ;;  %v1319_v1 = vadd.f32 %v1280_v52, %v3197_v19  ;;  %2069 = vmatprep.subr.bf16.mxu1 %v2326_v28  ;;  %v1396_v62 = vmin.f32 %v3391_v48, 0.0  ;;  %v1524_v8 = vand.u32 2147483647, %v1027_v37 }
 0x311   : > { %v1574_v33 = vsel %vm1567_vm2, %v1547_v14, %v1009_v40  ;;  %v1496_v12 = vsel %vm1366_vm11, %v3322_v18, %v1925_v13  ;;  %vm1370_vm15 = vcmp.gt.f32.partialorder %v3391_v48, 0.0 }
 0x312   : > { %v2189_v63 = vpop.eup %2188  ;;  %v1548_v32 = vmul.f32 %v1522_v20, %v1496_v12  ;;  %v3401_v15 = vadd.f32 %v1319_v1, %v693_v6  ;;  %v1433_v42 = vmul.f32 1.442695, %v1396_v62  ;;  %v3673_v1 = vld [vmem:[#allocation11_spill] sm:$0xff]  ;;  %v3674_v62 = vld [vmem:[#allocation25_spill] sm:$0xff] }
 0x313   : > { %v1926_v3 = vadd.f32 -1.0, %v2189_v63  ;;  %v1282_v43 = vpop.permute.xlu1 %1281  ;;  %v1039_v63 = vadd.f32 %v3674_v62, %v3245_v39 }
 0x314   : > { %v1575_v19 = vsel %vm1567_vm2, %v1548_v32, %v1015_v24  ;;  %v1397_v40 = vmin.f32 %v3401_v15, 0.0  ;;  %v1320_v18 = vadd.f32 %v1282_v43, %v3202_v51  ;;  %2194 = vpow2.f32 %v1433_v42  ;;  %v3671_v24 = vld [vmem:[#allocation10_spill] sm:$0xff]  ;;  %v3672_v51 = vld [vmem:[#allocation24_spill] sm:$0xff] }
 0x315   : > { %v1497_v58 = vsel %vm1367_vm12, %v3341_v44, %v1926_v3  ;;  %v2070_v16 = vpack.c.bf16 %v1575_v19, %v1574_v33  ;;  %v705_v11 = vadd.f32 %v3671_v24, %v3218_v41  ;;  %v1033_v4 = vadd.f32 %v3672_v51, %v3245_v39  ;;  %v3675_v42 = vld [vmem:[#allocation26_spill] sm:$0xff] }
 0x316   : > { %v1549_v0 = vmul.f32 %v1523_v26, %v1497_v58  ;;  %v1435_v54 = vmul.f32 1.442695, %v1397_v40  ;;  %v3412_v57 = vadd.f32 %v1320_v18, %v699_v53  ;;  %v711_v33 = vadd.f32 %v3673_v1, %v3218_v41 }
 0x317   : > { %v2191_v2 = vpop.eup %2190  ;;  %2072 = vmatpush1.bf16.xpose.msk.msra.mxu1 %vm3310_vm5, %v2070_v16  ;;  %v1284_v38 = vpop.permute.xlu0 %1283  ;;  %v1045_v43 = vadd.f32 %v3675_v42, %v3245_v39  ;;  %v1526_v18 = vand.u32 2147483647, %v1039_v63  ;;  %vm1371_vm0 = vcmp.gt.f32.partialorder %v3401_v15, 0.0 }
 0x318   : > { %v1576_v7 = vsel %vm1567_vm2, %v1549_v0, %v1021_v46  ;;  %v1927_v44 = vadd.f32 -1.0, %v2191_v2  ;;  %2196 = vpow2.f32 %v1435_v54  ;;  %2073 = vmatprep.subr.bf16.mxu1 %v2326_v28  ;;  %v1398_v29 = vmin.f32 %v3412_v57, 0.0  ;;  %v3676_v2 = vld [vmem:[#allocation27_spill] sm:$0xff] }
 0x319   : > { %v1321_v6 = vadd.f32 %v1284_v38, %v3207_v55  ;;  %v1525_v46 = vand.u32 2147483647, %v1033_v4  ;;  %v1527_v54 = vand.u32 2147483647, %v1045_v43  ;;  %v1051_v24 = vadd.f32 %v3676_v2, %v3245_v39 }
 0x31a   : > { %v2193_v50 = vpop.eup %2192  ;;  %v1498_v45 = vsel %vm1368_vm13, %v3360_v27, %v1927_v44  ;;  %v1437_v13 = vmul.f32 1.442695, %v1398_v29  ;;  %vm1372_vm1 = vcmp.gt.f32.partialorder %v3412_v57, 0.0  ;;  %v3677_v29 = vld [vmem:[#allocation28_spill] sm:$0xff] }
 0x31b   : > { %v1550_v9 = vmul.f32 %v1524_v8, %v1498_v45  ;;  %v1928_v14 = vadd.f32 -1.0, %v2193_v50  ;;  %v1347_v52 = vadd.f32 %v1321_v6, %v705_v11  ;;  %v1286_v20 = vpop.permute.xlu1 %1285  ;;  %v1528_v8 = vand.u32 2147483647, %v1051_v24 }
 0x31c   : > { %v1322_v12 = vadd.f32 %v1286_v20, %v3212_v61  ;;  %2198 = vpow2.f32 %v1437_v13  ;;  %v1057_v6 = vadd.f32 %v3677_v29, %v3245_v39 }
 0x31d   : > { %v1577_v55 = vsel %vm1567_vm2, %v1550_v9, %v1027_v37  ;;  %v1499_v27 = vsel %vm1369_vm14, %v3374_v59, %v1928_v14  ;;  %v1399_v26 = vmin.f32 %v1347_v52, 0.0  ;;  %v3678_v9 = vld [vmem:[#allocation29_spill] sm:$0xff]  ;;  %vm1373_vm3 = vcmp.gt.f32.partialorder %v1347_v52, 0.0 }
 0x31e   : > { %v1551_v32 = vmul.f32 %v1525_v46, %v1499_v27  ;;  %v1348_v23 = vadd.f32 %v1322_v12, %v711_v33  ;;  %v2074_v53 = vpack.c.bf16 %v1577_v55, %v1576_v7  ;;  %v2195_v3 = vpop.eup %2194  ;;  %v1063_v14 = vadd.f32 %v3678_v9, %v3245_v39 }
 0x31f   : > { %v1929_v40 = vadd.f32 -1.0, %v2195_v3  ;;  %v1439_v61 = vmul.f32 1.442695, %v1399_v26  ;;  %v1529_v46 = vand.u32 2147483647, %v1057_v6  ;;  %v3679_v3 = vld [vmem:[#allocation12_spill] sm:$0xff] }
 0x320   : > { %v1578_v19 = vsel %vm1567_vm2, %v1551_v32, %v1033_v4  ;;  %2076 = vmatpush1.bf16.xpose.msk.msra.mxu1 %vm3310_vm5, %v2074_v53  ;;  %v1400_v59 = vmin.f32 %v1348_v23, 0.0  ;;  %v1530_v55 = vand.u32 2147483647, %v1063_v14  ;;  %vm1374_vm6 = vcmp.gt.f32.partialorder %v1348_v23, 0.0 }
 0x321   : > { %2077 = vmatprep.subr.bf16.mxu1 %v2326_v28  ;;  %v1500_v37 = vsel %vm1370_vm15, %v3391_v48, %v1929_v40  ;;  %2200 = vpow2.f32 %v1439_v61  ;;  %v717_v42 = vadd.f32 %v3679_v3, %v3218_v41  ;;  %v3680_v61 = vld [vmem:[#allocation13_spill] sm:$0xff] }
 0x322   : > { %v2197_v17 = vpop.eup %2196  ;;  %v1552_v58 = vmul.f32 %v1526_v18, %v1500_v37  ;;  %v1441_v0 = vmul.f32 1.442695, %v1400_v59 }
 0x323   : > { %v1930_v16 = vadd.f32 -1.0, %v2197_v17 }
 0x324   : > { %v1579_v11 = vsel %vm1567_vm2, %v1552_v58, %v1039_v63  ;;  %2202 = vpow2.f32 %v1441_v0 }
 0x325   : > { %v1501_v38 = vsel %vm1371_vm0, %v3401_v15, %v1930_v16  ;;  %v2078_v4 = vpack.c.bf16 %v1579_v11, %v1578_v19  ;;  %v3681_v16 = vld [vmem:[#allocation14_spill] sm:$0xff] }
 0x326   : > { %v1553_v51 = vmul.f32 %v1527_v54, %v1501_v38  ;;  %v2199_v7 = vpop.eup %2198  ;;  %v729_v0 = vadd.f32 %v3681_v16, %v3218_v41  ;;  %v3682_v38 = vld [vmem:[#allocation15_spill] sm:$0xff] }
 0x327   : > { %v1931_v44 = vadd.f32 -1.0, %v2199_v7 }
 0x328   : > { %v1580_v48 = vsel %vm1567_vm2, %v1553_v51, %v1045_v43  ;;  %2080 = vmatpush1.bf16.xpose.msk.msra.mxu1 %vm3310_vm5, %v2078_v4  ;;  %v735_v51 = vadd.f32 %v3682_v38, %v3218_v41 }
 0x329   : > { %2081 = vmatprep.subr.bf16.mxu1 %v2326_v28  ;;  %v1502_v15 = vsel %vm1372_vm1, %v3412_v57, %v1931_v44  ;;  %v3683_v44 = vld [vmem:[#allocation30_spill] sm:$0xff] }
 0x32a   : > { %v1554_v50 = vmul.f32 %v1528_v8, %v1502_v15  ;;  %v1069_v8 = vadd.f32 %v3683_v44, %v3245_v39 }
 0x32b   : > { %v2201_v45 = vpop.eup %2200 }
 0x32c   : > { %v1581_v13 = vsel %vm1567_vm2, %v1554_v50, %v1051_v24  ;;  %v1932_v20 = vadd.f32 -1.0, %v2201_v45 }
 0x32d   : > { %v2082_v1 = vpack.c.bf16 %v1581_v13, %v1580_v48 }
 0x32e   : > { %v2203_v33 = vpop.eup %2202  ;;  %v1503_v12 = vsel %vm1373_vm3, %v1347_v52, %v1932_v20  ;;  %v3685_v20 = vld [vmem:[#allocation31_spill] sm:$0xff] }
 0x32f   : > { %v1555_v62 = vmul.f32 %v1529_v46, %v1503_v12  ;;  %v1933_v63 = vadd.f32 -1.0, %v2203_v33  ;;  %v1075_v46 = vadd.f32 %v3685_v20, %v3245_v39  ;;  %v3686_v33 = vld [vmem:[#allocation17_spill] sm:$0xff] }
 0x330   : > { %2084 = vmatpush1.bf16.xpose.msk.msra.mxu1 %vm3310_vm5, %v2082_v1  ;;  %v747_v12 = vadd.f32 %v3686_v33, %v3218_v41 }
 0x331   : > { %2085 = vmatprep.subr.bf16.mxu1 %v2326_v28  ;;  %v1582_v57 = vsel %vm1567_vm2, %v1555_v62, %v1057_v6  ;;  %v1504_v27 = vsel %vm1374_vm6, %v1348_v23, %v1933_v63  ;;  %v723_v23 = vadd.f32 %v3680_v61, %v3218_v41  ;;  %v3684_v6 = vld [vmem:[#allocation16_spill] sm:$0xff]  ;;  %v1532_v3 = vand.u32 2147483647, %v1075_v46 }
 0x332   : > { %v1556_v32 = vmul.f32 %v1530_v55, %v1504_v27  ;;  %v741_v15 = vadd.f32 %v3684_v6, %v3218_v41  ;;  %v3687_v27 = vld [vmem:[#allocation32_spill] sm:$0xff] }
 0x334   : > { %v1583_v26 = vsel %vm1567_vm2, %v1556_v32, %v1063_v14  ;;  %v1081_v32 = vadd.f32 %v3687_v27, %v3245_v39 }
 0x335   : > { %v2086_v53 = vpack.c.bf16 %v1583_v26, %v1582_v57 }
 0x336   : > { %v1533_v16 = vand.u32 2147483647, %v1081_v32 }
 0x338   : > { %2088 = vmatpush1.bf16.xpose.msk.msra.mxu1 %vm3310_vm5, %v2086_v53 }
 0x339   : > { %2089 = vmatprep.subr.bf16.mxu1 %v2326_v28 }
 0x358   : > { %v1288_v52 = vpop.permute.xlu0 %1287 }
 0x359   : > { %v1323_v43 = vadd.f32 %v1288_v52, %v3227_v35 }
 0x35b   : > { %v1349_v19 = vadd.f32 %v1323_v43, %v717_v42 }
 0x35c   : > { %v1290_v40 = vpop.permute.xlu1 %1289 }
 0x35d   : > { %v1401_v18 = vmin.f32 %v1349_v19, 0.0  ;;  %v1324_v59 = vadd.f32 %v1290_v40, %v3235_v60  ;;  %vm1375_vm7 = vcmp.gt.f32.partialorder %v1349_v19, 0.0 }
 0x35f   : > { %v1443_v17 = vmul.f32 1.442695, %v1401_v18  ;;  %v1350_v37 = vadd.f32 %v1324_v59, %v723_v23  ;;  %v3689_v18 = vld [vmem:[#allocation19_spill] sm:$0xff] }
 0x360   : > { %v1292_v58 = vpop.permute.xlu0 %1291  ;;  %v759_v59 = vadd.f32 %v3689_v18, %v3218_v41 }
 0x361   : > { %2204 = vpow2.f32 %v1443_v17  ;;  %v1402_v54 = vmin.f32 %v1350_v37, 0.0  ;;  %v1325_v2 = vadd.f32 %v1292_v58, %v3253_v34  ;;  %vm1376_vm8 = vcmp.gt.f32.partialorder %v1350_v37, 0.0 }
 0x363   : > { %v1445_v24 = vmul.f32 1.442695, %v1402_v54  ;;  %v1351_v35 = vadd.f32 %v1325_v2, %v729_v0  ;;  %v3690_v0 = vld [vmem:[#allocation33_spill] sm:$0xff] }
 0x364   : > { %v1294_v11 = vpop.permute.xlu1 %1293  ;;  %v1087_v54 = vadd.f32 %v3690_v0, %v3245_v39 }
 0x365   : > { %2206 = vpow2.f32 %v1445_v24  ;;  %v1403_v4 = vmin.f32 %v1351_v35, 0.0  ;;  %v1326_v60 = vadd.f32 %v1294_v11, %v3266_v10  ;;  %v1531_v10 = vand.u32 2147483647, %v1069_v8 }
 0x366   : > { %vm1377_vm9 = vcmp.gt.f32.partialorder %v1351_v35, 0.0 }
 0x367   : > { %v1447_v7 = vmul.f32 1.442695, %v1403_v4  ;;  %v3478_v48 = vadd.f32 %v1326_v60, %v735_v51 }
 0x368   : > { %v1296_v34 = vpop.permute.xlu0 %1295 }
 0x369   : > { %2208 = vpow2.f32 %v1447_v7  ;;  %v1404_v29 = vmin.f32 %v3478_v48, 0.0  ;;  %v1327_v50 = vadd.f32 %v1296_v34, %v3280_v22  ;;  %v3691_v34 = vld [vmem:[#allocation34_spill] sm:$0xff]  ;;  %vm1378_vm10 = vcmp.gt.f32.partialorder %v3478_v48, 0.0 }
 0x36a   : > { %v1093_v6 = vadd.f32 %v3691_v34, %v3245_v39 }
 0x36b   : > { %v2205_v45 = vpop.eup %2204  ;;  %v1449_v9 = vmul.f32 1.442695, %v1404_v29  ;;  %v3486_v13 = vadd.f32 %v1327_v50, %v741_v15  ;;  %v1534_v29 = vand.u32 2147483647, %v1087_v54 }
 0x36c   : > { %v1934_v14 = vadd.f32 -1.0, %v2205_v45  ;;  %v1298_v1 = vpop.permute.xlu1 %1297 }
 0x36d   : > { %2210 = vpow2.f32 %v1449_v9  ;;  %v1405_v63 = vmin.f32 %v3486_v13, 0.0  ;;  %v1328_v22 = vadd.f32 %v1298_v1, %v3295_v49  ;;  %v3688_v49 = vld [vmem:[#allocation18_spill] sm:$0xff]  ;;  %v3692_v9 = vld [vmem:[#allocation20_spill] sm:$0xff]  ;;  %vm1379_vm11 = vcmp.gt.f32.partialorder %v3486_v13, 0.0 }
 0x36e   : > { %v1505_v62 = vsel %vm1375_vm7, %v1349_v19, %v1934_v14  ;;  %v753_v23 = vadd.f32 %v3688_v49, %v3218_v41  ;;  %v765_v14 = vadd.f32 %v3692_v9, %v3218_v41 }
 0x36f   : > { %v2207_v55 = vpop.eup %2206  ;;  %v1557_v57 = vmul.f32 %v1531_v10, %v1505_v62  ;;  %v1451_v53 = vmul.f32 1.442695, %v1405_v63  ;;  %v3496_v52 = vadd.f32 %v1328_v22, %v747_v12  ;;  %v1535_v12 = vand.u32 2147483647, %v1093_v6  ;;  %v3693_v62 = vld [vmem:[#allocation21_spill] sm:$0xff] }
 0x370   : > { %v1935_v26 = vadd.f32 -1.0, %v2207_v55  ;;  %v1300_v43 = vpop.permute.xlu0 %1299  ;;  %v771_v63 = vadd.f32 %v3693_v62, %v3218_v41 }
 0x371   : > { %v1584_v42 = vsel %vm1567_vm2, %v1557_v57, %v1069_v8  ;;  %2212 = vpow2.f32 %v1451_v53  ;;  %v1406_v19 = vmin.f32 %v3496_v52, 0.0  ;;  %v1329_v58 = vadd.f32 %v1300_v43, %v3317_v47 }
 0x372   : > { %v1506_v40 = vsel %vm1376_vm8, %v1350_v37, %v1935_v26  ;;  %vm1380_vm12 = vcmp.gt.f32.partialorder %v3496_v52, 0.0 }
 0x373   : > { %v2209_v61 = vpop.eup %2208  ;;  %v1558_v17 = vmul.f32 %v1532_v3, %v1506_v40  ;;  %v1453_v24 = vmul.f32 1.442695, %v1406_v19  ;;  %v3508_v38 = vadd.f32 %v1329_v58, %v753_v23  ;;  %v3695_v23 = vld [vmem:[#allocation36_spill] sm:$0xff] }
 0x374   : > { %v1936_v2 = vadd.f32 -1.0, %v2209_v61  ;;  %v1302_v37 = vpop.permute.xlu1 %1301 }
 0x375   : > { %v1585_v11 = vsel %vm1567_vm2, %v1558_v17, %v1075_v46  ;;  %v1330_v51 = vadd.f32 %v1302_v37, %v3333_v30  ;;  %2214 = vpow2.f32 %v1453_v24  ;;  %v1407_v47 = vmin.f32 %v3508_v38, 0.0 }
 0x376   : > { %v1507_v4 = vsel %vm1377_vm9, %v1351_v35, %v1936_v2  ;;  %v2090_v60 = vpack.c.bf16 %v1585_v11, %v1584_v42  ;;  %vm1381_vm13 = vcmp.gt.f32.partialorder %v3508_v38, 0.0 }
 0x377   : > { %v2211_v7 = vpop.eup %2210  ;;  %v1559_v44 = vmul.f32 %v1533_v16, %v1507_v4  ;;  %v3512_v8 = vadd.f32 %v1330_v51, %v759_v59  ;;  %v1455_v30 = vmul.f32 1.442695, %v1407_v47  ;;  %v3696_v16 = vld [vmem:[#allocation37_spill] sm:$0xff] }
 0x378   : > { %v1937_v15 = vadd.f32 -1.0, %v2211_v7  ;;  %2092 = vmatpush1.bf16.xpose.msk.msra.mxu1 %vm3310_vm5, %v2090_v60  ;;  %v1111_v0 = vadd.f32 %v3696_v16, %v3245_v39  ;;  %v1117_v7 = vadd.f32 %v3102_v31, %v3245_v39 }
 0x379   : > { %v1586_v50 = vsel %vm1567_vm2, %v1559_v44, %v1081_v32  ;;  %v1408_v35 = vmin.f32 %v3512_v8, 0.0  ;;  %v1304_v45 = vpop.permute.xlu0 %1303  ;;  %2093 = vmatprep.subr.bf16.mxu1 %v2326_v28  ;;  %2216 = vpow2.f32 %v1455_v30  ;;  %vm1382_vm14 = vcmp.gt.f32.partialorder %v3512_v8, 0.0 }
 0x37a   : > { %v1508_v10 = vsel %vm1378_vm10, %v3478_v48, %v1937_v15  ;;  %v1331_v20 = vadd.f32 %v1304_v45, %v3353_v56  ;;  %v3694_v48 = vld [vmem:[#allocation35_spill] sm:$0xff]  ;;  %v1538_v60 = vand.u32 2147483647, %v1111_v0 }
 0x37b   : > { %v1560_v46 = vmul.f32 %v1534_v29, %v1508_v10  ;;  %v1457_v1 = vmul.f32 1.442695, %v1408_v35  ;;  %v2213_v33 = vpop.eup %2212  ;;  %v1099_v26 = vadd.f32 %v3694_v48, %v3245_v39 }
 0x37c   : > { %v1357_v22 = vadd.f32 %v1331_v20, %v765_v14  ;;  %v1306_v55 = vpop.permute.xlu1 %1305  ;;  %v1938_v27 = vadd.f32 -1.0, %v2213_v33 }
 0x37d   : > { %v1587_v57 = vsel %vm1567_vm2, %v1560_v46, %v1087_v54  ;;  %2218 = vpow2.f32 %v1457_v1  ;;  %v1332_v32 = vadd.f32 %v1306_v55, %v3368_v21  ;;  %v1536_v21 = vand.u32 2147483647, %v1099_v26  ;;  %v1594_v46 = vld [vmem:[%s3620_s2 + $0x20] sm:$0xff] }
 0x37e   : > { %v1409_v56 = vmin.f32 %v1357_v22, 0.0  ;;  %v2094_v53 = vpack.c.bf16 %v1587_v57, %v1586_v50  ;;  %v1509_v3 = vsel %vm1379_vm11, %v3486_v13, %v1938_v27  ;;  %v1105_v13 = vadd.f32 %v3695_v23, %v3245_v39 }
 0x37f   : > { %v1358_v42 = vadd.f32 %v1332_v32, %v771_v63  ;;  %v2215_v43 = vpop.eup %2214  ;;  %v1561_v41 = vmul.f32 %v1535_v12, %v1509_v3  ;;  %v1539_v50 = vand.u32 2147483647, %v1117_v7  ;;  %vm1383_vm15 = vcmp.gt.f32.partialorder %v1357_v22, 0.0 }
 0x380   : > { %v1459_v40 = vmul.f32 1.442695, %v1409_v56  ;;  %2096 = vmatpush1.bf16.xpose.msk.msra.mxu1 %vm3310_vm5, %v2094_v53  ;;  %v1939_v19 = vadd.f32 -1.0, %v2215_v43  ;;  %v1537_v37 = vand.u32 2147483647, %v1105_v13  ;;  %v3697_v55 = vlaneseq }
 0x381   : > { %v1410_v61 = vmin.f32 %v1358_v42, 0.0  ;;  %2097 = vmatprep.subr.bf16.mxu1 %v2326_v28  ;;  %v1588_v49 = vsel %vm1567_vm2, %v1561_v41, %v1093_v6  ;;  %vm1384_vm0 = vcmp.gt.f32.partialorder %v1358_v42, 0.0  ;;  %v2327_v1 = vmov 1966171168  }
 0x382   : > { %2220 = vpow2.f32 %v1459_v40  ;;  %v1510_v18 = vsel %vm1380_vm12, %v3496_v52, %v1939_v19  ;;  %v1752_v33 = vunpack.c.l.s4 %v2327_v1 }
 0x383   : > { %v1461_v59 = vmul.f32 1.442695, %v1410_v61  ;;  %v1562_v17 = vmul.f32 %v1536_v21, %v1510_v18  ;;  %v2217_v58 = vpop.eup %2216 }
 0x384   : > { %v1940_v2 = vadd.f32 -1.0, %v2217_v58  ;;  %v1753_v12 = vunpack.c.0.s8 %v1752_v33 }
 0x385   : > { %2222 = vpow2.f32 %v1461_v59  ;;  %v1589_v54 = vsel %vm1567_vm2, %v1562_v17, %v1099_v26 }
 0x386   : > { %v2098_v11 = vpack.c.bf16 %v1589_v54, %v1588_v49  ;;  %v1511_v51 = vsel %vm1381_vm13, %v3508_v38, %v1940_v2  ;;  %v1123_v38 = vadd.f32 %v3109_v5, %v3245_v39  ;;  %v1756_v62 = vsub.s32 %v1753_v12, %v2658_v25 }
 0x387   : > { %v2219_v24 = vpop.eup %2218  ;;  %v1563_v52 = vmul.f32 %v1537_v37, %v1511_v51 }
 0x388   : > { %v1941_v4 = vadd.f32 -1.0, %v2219_v24  ;;  %2100 = vmatpush1.bf16.xpose.msk.msra.mxu1 %vm3310_vm5, %v2098_v11  ;;  %v1540_v9 = vand.u32 2147483647, %v1123_v38 }
 0x389   : > { %2101 = vmatprep.subr.bf16.mxu1 %v2326_v28  ;;  %v1590_v47 = vsel %vm1567_vm2, %v1563_v52, %v1105_v13 }
 0x38a   : > { %v1512_v44 = vsel %vm1382_vm14, %v3512_v8, %v1941_v4 }
 0x38b   : > { %v1564_v29 = vmul.f32 %v1538_v60, %v1512_v44 }
 0x38c   : > { %v2221_v34 = vpop.eup %2220 }
 0x38d   : > { %v1591_v6 = vsel %vm1567_vm2, %v1564_v29, %v1111_v0  ;;  %v1942_v15 = vadd.f32 -1.0, %v2221_v34 }
 0x38e   : > { %v2102_v30 = vpack.c.bf16 %v1591_v6, %v1590_v47 }
 0x38f   : > { %v2223_v35 = vpop.eup %2222  ;;  %v1513_v45 = vsel %vm1383_vm15, %v1357_v22, %v1942_v15 }
 0x390   : > { %v1565_v31 = vmul.f32 %v1539_v50, %v1513_v45  ;;  %v1943_v8 = vadd.f32 -1.0, %v2223_v35  ;;  %2104 = vmatpush1.bf16.xpose.msk.msra.mxu1 %vm3310_vm5, %v2102_v30 }
 0x391   : > { %2105 = vmatprep.subr.bf16.mxu1 %v2326_v28 }
 0x392   : > { %v1592_v14 = vsel %vm1567_vm2, %v1565_v31, %v1117_v7  ;;  %v1514_v10 = vsel %vm1384_vm0, %v1358_v42, %v1943_v8 }
 0x393   : > { %v1566_v5 = vmul.f32 %v1540_v9, %v1514_v10 }
 0x395   : > { %v1593_v39 = vsel %vm1567_vm2, %v1566_v5, %v1123_v38  ;;  %vm1768_vm2 = vcmp.lt.s32.totalorder %v3697_v55, 208 }
 0x396   : > { %v2106_v20 = vpack.c.bf16 %v1593_v39, %v1592_v14 }
 0x398   : > { %2108 = vmatpush1.bf16.xpose.msk.msra.mxu1 %vm3310_vm5, %v2106_v20 }
 0x39f   : > { %1970 = vmatmul.mubr.msk.f32.vlgmr.msra.gmra.mrb[72].mxu1 %vm1595_vm4, %v1594_v46 }
 0x472   : > { %v1743_v28 = vpop.f32.mrb[72].mxu1 }
 0x473   : > { %v1745_v63 = vpop.f32.mrb[73].mxu1 }
 0x474   : > { %v1750_v22 = vcombine.low %v1743_v28, %v1745_v63 }
 0x476   : > { %v1757_v36 = vrot.slane %v1750_v22, %v1756_v62 }
 0x478   : > { %v1764_v57 = vrot.slane %v1757_v36, %v1756_v62 }
 0x47a   : > { %1770 = vst.msk [vmem:[%s179_s11] sm:$0x3] %vm1768_vm2, %v1764_v57 }
 0x47b   : > { %2265 = shalt.err (!%p2262_p7)
}
 0x47c   : > { %s2266_s29 = scalar_lea.hbm %s3576_s24, 32  ;;  %s2270_s5 = scalar_lea.hbm %s3621_s3, 64 }
 0x47d   : > { %p2267_p8 = scmp.ne.s32.totalorder %s3576_s24, %s2266_s29  ;;  %p2271_p1 = scmp.lt.u32.totalorder %s3576_s24, %s3621_s3 }
 0x47e   : > { %p2272_p0 = scmp.lt.u32.totalorder %s2270_s5, %s2266_s29  ;;  %p2274_p6 = scmp.lt.u32.totalorder %s2266_s29, %s3576_s24 }
 0x47f   : > { %p2268_p11 = pnand %p2267_p8, %p3698_p9 }
 0x480   : > { %p2273_p5 = por %p2272_p0, %p2271_p1 }
 0x481   : > { %p2269_p13 = pneg %p2268_p11 }
 0x482   : > { %p2275_p10 = por %p2274_p6, %p2273_p5 }
 0x484   : > { %p2276_p12 = pnand %p2275_p10, %p2269_p13 }
 0x486   : > { %2279 = shalt.err (!%p2276_p12)
}
 0x487   : > { %2119 = dma.vmem_to_hbm [thread:$0]  (%p3698_p9), %s3578_s17, 32, %s3576_s24, %s1772_s25  }
 0x488 PF: > { %p2131_p2 = scmp.ge.s32.totalorder %s2318_s15, 2  ;;  %s1798_s8 = sand.u32 1, %s2306_s12  }
 0x489   : > { %p3699_p3 = scmp.ne.s32.totalorder %s3628_s23, 0  ;;  %s1799_s9 = scalar_lea.sflag [#allocation4], %s1798_s8 }
 0x48b   : > { %p2126_p4 = pnand %p2131_p2, %p3699_p3 }
 0x48d   : > { %2301 = dma.done.wait (!%p2126_p4), %s1799_s9, 32  }
 0x48e   : > { %2303 = vsyncadd (!%p2126_p4), %s1799_s9, 4294967264  ;;  %p14_p7 = scmp.ge.s32.totalorder %s2374_s18, 4   ;;  %s3700_s12 = smov %s2310_s13 }
 0x48f   : > { %s3701_s13 = smov %s2314_s14  ;;  %s3702_s14 = smov %s2385_s21 }
 0x490   : > { %s3703_s15 = smov %s2374_s18  ;;  %16 = sbr.rel (!%p14_p7) target bundleno = 4 (0x4), region = 73 }
 0x497   :  { %1804 = vsyncpa [#allocation3], 1 }
 0x498   :  { %1806 = vsyncpa [#allocation3 + $0x1], 1 }
 0x499   :  { %1807 = vsyncpa [#allocation4], 1 }
 0x49a   :  { %1809 = vsyncpa [#allocation4 + $0x1], 1 }

</bundles_post_ra>
